<compile_context>
chip_gen: v5e
topology: v5e:2x2
jax: 0.10.0
libtpu: 0.0.40
codegen_flags: <defaults>
</compile_context>

<pallas_src>
import numpy as np
import jax
import jax.numpy as jnp
from jax.experimental import pallas as pl
from jax.experimental.pallas import tpu as pltpu


# ----------------------------------------------------------------------------
# Pallas kernel: fused (p+1)*x' -> 3x3 reflect gaussian blur -> normalize
# ----------------------------------------------------------------------------
def _blur3_reflect(x, axis, ws, wc):
    """Symmetric 3-tap blur with reflect padding along `axis` (1 = H, 2 = W).

    Two pltpu.roll calls (XLU) form the wrapped neighbour sum; the reflect
    edges reuse the same rolls:
      roll(x, n-1)[0]   == x[1]    -> neighbour sum at i=0    is 2*x[1]
      roll(x, 1)[n-1]   == x[n-2]  -> neighbour sum at i=n-1  is 2*x[n-2]
    """
    n = x.shape[axis]
    rm = pltpu.roll(x, 1, axis)        # rm[i] = x[i-1]  (wraps at i=0)
    rp = pltpu.roll(x, n - 1, axis)    # rp[i] = x[i+1]  (wraps at i=n-1)
    # Small (H, W) iota along the blurred axis; broadcast across the leading
    # depth dim is free (same mask replicated per slice).
    idx = jax.lax.broadcasted_iota(jnp.int32, x.shape[1:], axis - 1)
    s = rm + rp
    s = jnp.where(idx == 0, 2.0 * rp, s)       # reflect edge: x[-1] := x[1]
    s = jnp.where(idx == n - 1, 2.0 * rm, s)   # reflect edge: x[n]  := x[n-2]
    return wc * x + ws * s


def fuse_kernel(p_ref, x_ref, params_ref, o_ref):
    # p_ref / x_ref / o_ref : (TD, H, W) float32
    # params_ref            : SMEM float32[4] = [ws, wc, 1/std, mean/std]
    ws = params_ref[0]
    wc = params_ref[1]
    inv_std = params_ref[2]
    offset = params_ref[3]
    fused = (p_ref[...] + 1.0) * x_ref[...]                  # mask folded into x
    bh = _blur3_reflect(fused, 1, ws, wc)                    # blur along H
    bw = _blur3_reflect(bh, 2, ws * inv_std, wc * inv_std)   # blur along W, fold 1/std
    o_ref[...] = bw - offset                                 # Normalize


# ----------------------------------------------------------------------------
# Generation-aware tiling policy
# ----------------------------------------------------------------------------
def _tpu_vmem_config():
    """Return (vmem_limit_bytes, block_budget_bytes, num_tensorcores)."""
    phys = 128 * 1024 * 1024
    try:
        phys = int(pltpu.get_tpu_info().vmem_capacity_bytes)   # 64 MiB on v7x
    except Exception:
        pass
    try:
        if "v7" in jax.devices()[0].device_kind.lower():
            phys = min(phys, 64 * 1024 * 1024)
    except Exception:
        pass
    if phys <= 64 * 1024 * 1024:
        # v7x: 64 MiB physical VMEM per TensorCore, 2 TensorCores per chip.
        return 56 * 1024 * 1024, 40 * 1024 * 1024, 2
    # v5e / v6e: 128 MiB physical VMEM, single TensorCore.
    return 100 * 1024 * 1024, 84 * 1024 * 1024, 1


def _pick_block_depth(D, H, W, *, budget_bytes, num_tensorcores):
    """Depth slices per grid step.

    Working set per slice: double-buffered fp32 I/O (p, x, out) plus ~5 fp32
    blur temporaries. Single-TC chips take the largest block that fits (grid
    of 1 step is fine); 2-TC chips also require the grid length to be a
    multiple of the core count so the 'parallel' depth axis splits evenly.
    """
    per_slice = (2 * 3 * 4 + 5 * 4) * H * W
    td_max = int(max(1, min(D, budget_bytes // per_slice)))
    if num_tensorcores <= 1 or D <= 1:
        return td_max
    for td in range(td_max, 0, -1):
        if pl.cdiv(D, td) % num_tensorcores == 0:
            return td
    return td_max


def fuse_forward(p, x_eff, *, sigma, mean=0.7, std=0.22):
    """p, x_eff: float32 [D, H, W]; x_eff already has the vessel mask folded in.

    `sigma` may be a Python float or a traced jax scalar: the blur taps are
    runtime SMEM scalars, so one compiled kernel serves every sigma.
    """
    D, H, W = p.shape
    assert H >= 2 and W >= 2
    # torchvision GaussianBlur(3, sigma) taps: pdf(t)=exp(-0.5 (t/sigma)^2), t in {-1,0,1}
    sig = jnp.asarray(sigma, jnp.float32)
    side = jnp.exp(-0.5 / (sig * sig))
    denom = 1.0 + 2.0 * side
    params = jnp.stack([side / denom, 1.0 / denom,
                        jnp.float32(1.0 / std),
                        jnp.float32(mean / std)]).astype(jnp.float32)

    vmem_limit, budget, n_tc = _tpu_vmem_config()
    td = _pick_block_depth(D, H, W, budget_bytes=budget, num_tensorcores=n_tc)
    steps = pl.cdiv(D, td)
    n_vox = D * H * W
    # TODO(synk): for real workloads keep W a multiple of 128 (fold/pad in the
    # caller) so stores stay lane-dense; the demo below uses W = 128.
    return pl.pallas_call(
        fuse_kernel,
        out_shape=jax.ShapeDtypeStruct((D, H, W), jnp.float32),
        grid=(steps,),
        in_specs=[
            pl.BlockSpec((td, H, W), lambda i: (i, 0, 0)),        # p
            pl.BlockSpec((td, H, W), lambda i: (i, 0, 0)),        # masked scale x'
            pl.BlockSpec(memory_space=pltpu.MemorySpace.SMEM),    # [ws, wc, 1/std, mean/std]
        ],
        out_specs=pl.BlockSpec((td, H, W), lambda i: (i, 0, 0)),
        input_output_aliases={0: 0},      # p is dead after the call; write in place
        cost_estimate=pl.CostEstimate(flops=16 * n_vox, transcendentals=0,
                                      bytes_accessed=12 * n_vox),
        compiler_params=pltpu.CompilerParams(
            dimension_semantics=("parallel",),
            vmem_limit_bytes=vmem_limit),
    )(p, x_eff, params)


# ----------------------------------------------------------------------------
# Pure-JAX reference of the fused stage (for a correctness check in __main__)
# ----------------------------------------------------------------------------
def fuse_reference(p, x_scale, y0, sigma=0.55, mean=0.7, std=0.22):
    t = np.array([-1.0, 0.0, 1.0], dtype=np.float64)
    pdf = np.exp(-0.5 * (t / sigma) ** 2)
    k = jnp.asarray((pdf / pdf.sum()).astype(np.float32))
    f = jnp.where(y0 == 0.0, (p + 1.0) * x_scale, p + 1.0)

    def blur(v, axis):
        pad = [(0, 0)] * v.ndim
        pad[axis] = (1, 1)
        vp = jnp.pad(v, pad, mode="reflect")
        sl = lambda a: jax.lax.slice_in_dim(vp, a, a + v.shape[axis], axis=axis)
        return k[0] * sl(0) + k[1] * sl(1) + k[2] * sl(2)

    return (blur(blur(f, 1), 2) - mean) / std


# ----------------------------------------------------------------------------
# Plain-JAX glue reproducing VesselIntensitySynth1 / ParenchymaSynth1 setup
# ----------------------------------------------------------------------------
def vessel_intensity_synth(vessel_labels, max_label):
    """Deterministic stand-in for VesselIntensitySynth1.forward.

    vessel_labels: int32 [D, H, W] -> (scaling_tensor [D,H,W], onehot [3,D,H,W])
    """
    # TODO(synk): RandomFlipTransform x3 and the random label pruning / Uniform
    # intensity draws are stochastic library transforms; deterministic stand-ins.
    vl = vessel_labels[::-1, :, :].astype(jnp.float32)   # one deterministic flip
    D, H, W = vl.shape
    scaling = jnp.ones((D, H, W), jnp.float32)
    onehot = jnp.zeros((3, D, H, W), jnp.float32)
    mask = jnp.zeros((D, H, W), jnp.float32)
    # "prune_labels": hide ~half of the nonzero ids (deterministically the even ones)
    kept = [lid for lid in range(1, max_label + 1) if lid % 2 == 1]
    for lid in kept:
        m = vl == float(lid)
        if (lid // 2) % 2 == 0:
            intensity, cls = 0.25, 1     # stand-in for Uniform(0, 0.5)
        else:
            intensity, cls = 1.8, 2      # stand-in for Uniform(1.5, 2.1)
        onehot = onehot.at[cls].set(jnp.where(m, 1.0, onehot[cls]))
        scaling = jnp.where(m, intensity, scaling)
        mask = jnp.where(m, 1.0, mask)
    onehot = onehot.at[0].set(jnp.where(mask == 0.0, 1.0, onehot[0]))
    return scaling, onehot


def parenchyma_synth(shape, key):
    """Deterministic stand-in for ParenchymaSynth1.forward -> float32 [D, H, W]."""
    D, H, W = shape
    # TODO(synk): cornucopia RandomSmoothLabelMap / RandomSlicewiseMulFieldTransform /
    # SmoothBernoulliDiskTransform have no Pallas/JAX equivalent; deterministic
    # smooth label field + slicewise multiplicative field stand-in.
    zz, yy, xx = jnp.meshgrid(jnp.arange(D, dtype=jnp.float32),
                              jnp.arange(H, dtype=jnp.float32),
                              jnp.arange(W, dtype=jnp.float32), indexing="ij")
    smooth = jnp.sin(zz / 3.0) + jnp.cos(yy / 5.0) + jnp.sin(xx / 4.0)
    base = jnp.floor((smooth - smooth.min()) /
                     (smooth.max() - smooth.min() + 1e-6) * 2.999) + 1.0
    mul = 0.8 + 0.4 * jnp.cos(yy / 7.0) * jnp.sin(xx / 6.0)
    p = base * mul
    # inject_noise(p, 0.1)
    p = p + 0.1 * jax.random.normal(key, p.shape, dtype=jnp.float32)
    # p -= p.min() + 1
    p = p - (p.min() + 1.0)
    return p.astype(jnp.float32)


def fuse_synth1(vessel_labels, max_label, key):
    """FuseSynth1.forward equivalent: returns (final_out [D,H,W], y [3,D,H,W])."""
    x_scale, y = vessel_intensity_synth(vessel_labels, max_label)
    p = parenchyma_synth(x_scale.shape, key)
    # Fold the vessel mask into the scale upstream (x' = where(y0==0, x, 1)):
    # the kernel streams only p + x' (8 B/voxel read) and does a single mul.
    x_eff = jnp.where(y[0] == 0.0, x_scale, 1.0)
    # TODO(synk): sigma ~ Uniform(0.1, 1) in the original transform; fixed here
    # (the kernel takes sigma-derived taps as runtime scalars, so a random
    # sigma would not trigger a recompile).
    final_out = fuse_forward(p, x_eff, sigma=0.55)
    return final_out, y


# ----------------------------------------------------------------------------
if __name__ == "__main__":
    key = jax.random.PRNGKey(0)
    D, H, W = 8, 32, 128        # small, but lane-dense (W = 128)
    max_label = 7
    k1, k2, k3 = jax.random.split(key, 3)
    vessel_labels = jax.random.randint(k1, (D, H, W), 0, max_label + 1,
                                       dtype=jnp.int32)
    # make background (label 0) the most common value, like a sparse vessel map
    bg = jax.random.uniform(k2, (D, H, W)) < 0.6
    vessel_labels = jnp.where(bg, 0, vessel_labels)

    final_out, y = fuse_synth1(vessel_labels, max_label, k3)
    final_out = jax.block_until_ready(final_out)
    y = jax.block_until_ready(y)

    assert final_out.shape == (D, H, W) and final_out.dtype == jnp.float32
    assert y.shape == (3, D, H, W) and y.dtype == jnp.float32
    assert bool(jnp.all(jnp.isfinite(final_out)))

    # correctness check of the Pallas-fused stage against a pure-JAX reference
    # (the glue is deterministic, so recomputing yields identical inputs)
    x_scale, y_ref = vessel_intensity_synth(vessel_labels, max_label)
    p = parenchyma_synth(x_scale.shape, k3)
    ref = fuse_reference(p, x_scale, y_ref[0], sigma=0.55, mean=0.7, std=0.22)
    np.testing.assert_allclose(np.asarray(final_out), np.asarray(ref),
                               rtol=2e-3, atol=2e-3)

    print("KERNEL_OK")
</pallas_src>

<mosaic_0001>
module attributes {stable_mosaic.version = 11 : i64} {
  func.func @fuse_kernel(%arg0: i32, %arg1: memref<8x32x128xf32, #tpu.memory_space<vmem>>, %arg2: memref<8x32x128xf32, #tpu.memory_space<vmem>>, %arg3: memref<4xf32, #tpu.memory_space<smem>>, %arg4: memref<8x32x128xf32, #tpu.memory_space<vmem>>) attributes {dimension_semantics = [#tpu.dimension_semantics<parallel>], iteration_bounds = array<i64: 1>, scalar_prefetch = 0 : i64, scratch_operands = 0 : i64, tpu.core_type = #tpu.core_type<tc>, window_params = [{transform_indices = @transform_0, window_bounds = array<i64: 8, 32, 128>}, {transform_indices = @transform_1, window_bounds = array<i64: 8, 32, 128>}, {transform_indices = @transform_2, window_bounds = array<i64: 4>}, {transform_indices = @transform_3, window_bounds = array<i64: 8, 32, 128>}]} {
    %c0 = arith.constant 0 : index
    %0 = memref.load %arg3[%c0] : memref<4xf32, #tpu.memory_space<smem>>
    %c1 = arith.constant 1 : index
    %1 = memref.load %arg3[%c1] : memref<4xf32, #tpu.memory_space<smem>>
    %c2 = arith.constant 2 : index
    %2 = memref.load %arg3[%c2] : memref<4xf32, #tpu.memory_space<smem>>
    %c3 = arith.constant 3 : index
    %3 = memref.load %arg3[%c3] : memref<4xf32, #tpu.memory_space<smem>>
    %c0_0 = arith.constant 0 : index
    %c0_1 = arith.constant 0 : index
    %c0_2 = arith.constant 0 : index
    %4 = vector.load %arg1[%c0_0, %c0_1, %c0_2] : memref<8x32x128xf32, #tpu.memory_space<vmem>>, vector<8x32x128xf32>
    %cst = arith.constant 1.000000e+00 : f32
    %5 = vector.broadcast %cst : f32 to vector<8x32x128xf32>
    %6 = arith.addf %4, %5 : vector<8x32x128xf32>
    %c0_3 = arith.constant 0 : index
    %c0_4 = arith.constant 0 : index
    %c0_5 = arith.constant 0 : index
    %7 = vector.load %arg2[%c0_3, %c0_4, %c0_5] : memref<8x32x128xf32, #tpu.memory_space<vmem>>, vector<8x32x128xf32>
    %8 = arith.mulf %6, %7 : vector<8x32x128xf32>
    %c1_i32 = arith.constant 1 : i32
    %9 = tpu.dynamic_rotate %8 by %c1_i32 dim 1 : vector<8x32x128xf32>, i32 -> vector<8x32x128xf32>
    %c31_i32 = arith.constant 31 : i32
    %10 = tpu.dynamic_rotate %8 by %c31_i32 dim 1 : vector<8x32x128xf32>, i32 -> vector<8x32x128xf32>
    %11 = tpu.iota {dimensions = array<i32: 0>} : vector<32x128xi32>
    %12 = arith.addf %9, %10 : vector<8x32x128xf32>
    %c0_i32 = arith.constant 0 : i32
    %13 = vector.broadcast %c0_i32 : i32 to vector<32x128xi32>
    %14 = arith.cmpi eq, %11, %13 : vector<32x128xi32>
    %cst_6 = arith.constant 2.000000e+00 : f32
    %15 = vector.broadcast %cst_6 : f32 to vector<8x32x128xf32>
    %16 = arith.mulf %15, %10 : vector<8x32x128xf32>
    %17 = vector.shape_cast %14 : vector<32x128xi1> to vector<1x32x128xi1>
    %18 = vector.broadcast %17 : vector<1x32x128xi1> to vector<8x32x128xi1>
    %19 = arith.select %18, %16, %12 : vector<8x32x128xi1>, vector<8x32x128xf32>
    %c31_i32_7 = arith.constant 31 : i32
    %20 = vector.broadcast %c31_i32_7 : i32 to vector<32x128xi32>
    %21 = arith.cmpi eq, %11, %20 : vector<32x128xi32>
    %cst_8 = arith.constant 2.000000e+00 : f32
    %22 = vector.broadcast %cst_8 : f32 to vector<8x32x128xf32>
    %23 = arith.mulf %22, %9 : vector<8x32x128xf32>
    %24 = vector.shape_cast %21 : vector<32x128xi1> to vector<1x32x128xi1>
    %25 = vector.broadcast %24 : vector<1x32x128xi1> to vector<8x32x128xi1>
    %26 = arith.select %25, %23, %19 : vector<8x32x128xi1>, vector<8x32x128xf32>
    %27 = vector.broadcast %1 : f32 to vector<8x32x128xf32>
    %28 = arith.mulf %27, %8 : vector<8x32x128xf32>
    %29 = vector.broadcast %0 : f32 to vector<8x32x128xf32>
    %30 = arith.mulf %29, %26 : vector<8x32x128xf32>
    %31 = arith.addf %28, %30 : vector<8x32x128xf32>
    %32 = arith.mulf %0, %2 : f32
    %33 = arith.mulf %1, %2 : f32
    %c1_i32_9 = arith.constant 1 : i32
    %34 = tpu.dynamic_rotate %31 by %c1_i32_9 dim 2 : vector<8x32x128xf32>, i32 -> vector<8x32x128xf32>
    %c127_i32 = arith.constant 127 : i32
    %35 = tpu.dynamic_rotate %31 by %c127_i32 dim 2 : vector<8x32x128xf32>, i32 -> vector<8x32x128xf32>
    %36 = tpu.iota {dimensions = array<i32: 1>} : vector<32x128xi32>
    %37 = arith.addf %34, %35 : vector<8x32x128xf32>
    %c0_i32_10 = arith.constant 0 : i32
    %38 = vector.broadcast %c0_i32_10 : i32 to vector<32x128xi32>
    %39 = arith.cmpi eq, %36, %38 : vector<32x128xi32>
    %cst_11 = arith.constant 2.000000e+00 : f32
    %40 = vector.broadcast %cst_11 : f32 to vector<8x32x128xf32>
    %41 = arith.mulf %40, %35 : vector<8x32x128xf32>
    %42 = vector.shape_cast %39 : vector<32x128xi1> to vector<1x32x128xi1>
    %43 = vector.broadcast %42 : vector<1x32x128xi1> to vector<8x32x128xi1>
    %44 = arith.select %43, %41, %37 : vector<8x32x128xi1>, vector<8x32x128xf32>
    %c127_i32_12 = arith.constant 127 : i32
    %45 = vector.broadcast %c127_i32_12 : i32 to vector<32x128xi32>
    %46 = arith.cmpi eq, %36, %45 : vector<32x128xi32>
    %cst_13 = arith.constant 2.000000e+00 : f32
    %47 = vector.broadcast %cst_13 : f32 to vector<8x32x128xf32>
    %48 = arith.mulf %47, %34 : vector<8x32x128xf32>
    %49 = vector.shape_cast %46 : vector<32x128xi1> to vector<1x32x128xi1>
    %50 = vector.broadcast %49 : vector<1x32x128xi1> to vector<8x32x128xi1>
    %51 = arith.select %50, %48, %44 : vector<8x32x128xi1>, vector<8x32x128xf32>
    %52 = vector.broadcast %33 : f32 to vector<8x32x128xf32>
    %53 = arith.mulf %52, %31 : vector<8x32x128xf32>
    %54 = vector.broadcast %32 : f32 to vector<8x32x128xf32>
    %55 = arith.mulf %54, %51 : vector<8x32x128xf32>
    %56 = arith.addf %53, %55 : vector<8x32x128xf32>
    %57 = vector.broadcast %3 : f32 to vector<8x32x128xf32>
    %58 = arith.subf %56, %57 : vector<8x32x128xf32>
    %c0_14 = arith.constant 0 : index
    %c0_15 = arith.constant 0 : index
    %c0_16 = arith.constant 0 : index
    %59 = vector.load %arg4[%c0_14, %c0_15, %c0_16] : memref<8x32x128xf32, #tpu.memory_space<vmem>>, vector<8x32x128xf32>
    tpu.vector_store %arg4[%c0_14, %c0_15, %c0_16], %58 {strides = array<i32>} : memref<8x32x128xf32, #tpu.memory_space<vmem>>, vector<8x32x128xf32>,
    return
  }
  func.func @transform_0(%arg0: i32) -> (i32, i32, i32) {
    %c0_i32 = arith.constant 0 : i32
    %c0_i32_0 = arith.constant 0 : i32
    %c0_i32_1 = arith.constant 0 : i32
    return %arg0, %c0_i32, %c0_i32_0 : i32, i32, i32
  }
  func.func @transform_1(%arg0: i32) -> (i32, i32, i32) {
    %c0_i32 = arith.constant 0 : i32
    %c0_i32_0 = arith.constant 0 : i32
    %c0_i32_1 = arith.constant 0 : i32
    return %arg0, %c0_i32, %c0_i32_0 : i32, i32, i32
  }
  func.func @transform_2(%arg0: i32) -> i32 {
    %c0_i32 = arith.constant 0 : i32
    %c0_i32_0 = arith.constant 0 : i32
    return %c0_i32 : i32
  }
  func.func @transform_3(%arg0: i32) -> (i32, i32, i32) {
    %c0_i32 = arith.constant 0 : i32
    %c0_i32_0 = arith.constant 0 : i32
    %c0_i32_1 = arith.constant 0 : i32
    return %arg0, %c0_i32, %c0_i32_0 : i32, i32, i32
  }
}

</mosaic_0001>

<bundles_post_ra>
// kernel: tpu_custom_call.1
= control target key start
LH: loop header
LB: loop body
LE: loop exit
PB: predicated region body
PF: predicated region fallthrough
CT: control target
= control target key end

     0   :  { %8 = vsyncpa [#allocation3], 0  ;;  %s2213_s0 = inlined_call_operand.hbm [shape: f32[8,32,128], index: 0, kind: input, shape index: {}, may-alias: {0,3}]   ;;  %s2214_s1 = inlined_call_operand.vmem [shape: f32[8,32,128], index: 1, kind: input, shape index: {}]   ;;  %s2215_s2 = inlined_call_operand.vmem [shape: f32[4], index: 2, kind: input, shape index: {}]   ;;  %s2216_s3 = inlined_call_operand.hbm [shape: f32[8,32,128], index: 3, kind: output, shape index: {}, may-alias: {0,3}]  }
   0x1   :  { %9 = vsyncpa [#allocation5], 0 }
   0x2   :  { %10 = vsyncpa [#allocation4], 0  ;;  %s15_s14 = sshll.u32 %s2213_s0, 4  ;;  %s1150_s15 = smov [#allocation2]   ;;  %s16_s14 = int_to_ptr.hbm [resolvable:$true] %s15_s14 }
   0x3   :  { %s17_s16 = sshll.u32 %s1150_s15, 4  ;;  %s31_s19 = sshll.u32 %s2215_s2, 4  ;;  %s18_s16 = int_to_ptr.vmem [resolvable:$true] %s17_s16  ;;  %s32_s19 = int_to_ptr.vmem [resolvable:$true] %s31_s19 }
   0x4   :  { %s1151_s20 = smov 128   ;;  %s1152_s21 = smov 8  }
   0x5   :  { %23 = dma.hbm_to_vmem [thread:$0]  %s16_s14, 4096, %s18_s16, [#allocation3], %s1151_s20, %s1151_s20, %s1152_s21  }
   0x6   :  { %s1153_s22 = smov [#allocation6]  }
   0x7   :  { %34 = dma.vmem_to_smem %s32_s19, 16, %s1153_s22, [#allocation5]  }
   0x8   :  { %1144 = dma.done.wait [#allocation3], 4096  }
   0x9   :  { %1145 = vsyncadd [#allocation3], 4294963200 }
   0xa   :  { %1146 = dma.done.wait [#allocation5], 16  }
   0xb   :  { %1147 = vsyncadd [#allocation5], 4294967280 }
   0xc   :  { %43 = sfence }
   0xd   :  { %s1186_s0 = sld [smem:[#allocation6]]  ;;  %v52_v0 = vld [vmem:[#allocation2 + $0x20] sm:$0xff]  ;;  %v53_v1 = vld [vmem:[#allocation2 + $0x28] sm:$0xff]  ;;  %v54_v2 = vld [vmem:[#allocation2 + $0x30] sm:$0xff]  ;;  %v208_v3 = vlaneseq  ;;  %s1154_s12 = smov 1  }
   0xe   :  { %s1188_s2 = sld [smem:[#allocation6 + $0x1]]  ;;  %v84_v4 = vadd.f32 1.0, %v52_v0  ;;  %v85_v5 = vadd.f32 1.0, %v53_v1  ;;  %v86_v6 = vadd.f32 1.0, %v54_v2  ;;  %v116_v7 = vld [vmem:[%s2214_s1 + $0x20] sm:$0xff]  ;;  %v117_v8 = vld [vmem:[%s2214_s1 + $0x28] sm:$0xff] }
   0xf   :  { %v118_v9 = vld [vmem:[%s2214_s1 + $0x30] sm:$0xff]  ;;  %v1200_v10 = vshrl.u32 %v208_v3, 7  ;;  %v49_v14 = vld [vmem:[#allocation2 + $0x8] sm:$0xff]  ;;  %v51_v16 = vld [vmem:[#allocation2 + $0x18] sm:$0xff]  ;;  %s1076_s15 = sld [smem:[#allocation6 + $0x3]]  ;;  %s1060_s18 = sshll.u32 %s2216_s3, 4  ;;  %s1061_s18 = int_to_ptr.hbm [resolvable:$true] %s1060_s18 }
  0x10   :  { %v1202_v11 = vmul.f32 %v116_v7, %v84_v4  ;;  %v1204_v12 = vmul.f32 %v117_v8, %v85_v5  ;;  %v1206_v13 = vmul.f32 %v118_v9, %v86_v6  ;;  %v50_v15 = vld [vmem:[#allocation2 + $0x10] sm:$0xff]  ;;  %v81_v17 = vadd.f32 1.0, %v49_v14  ;;  %v113_v19 = vld [vmem:[%s2214_s1 + $0x8] sm:$0xff]  ;;  %v115_v25 = vld [vmem:[%s2214_s1 + $0x18] sm:$0xff] }
  0x11   :  { %vm210_vm0 = vcmp.lt.s32.totalorder %v1200_v10, 1  ;;  %vm275_vm1 = vcmp.lt.s32.totalorder %v1200_v10, 7  ;;  %v82_v18 = vadd.f32 1.0, %v50_v15  ;;  %v114_v20 = vld [vmem:[%s2214_s1 + $0x10] sm:$0xff]  ;;  %v48_v26 = vld [vmem:[#allocation2] sm:$0xff]  ;;  %v83_v28 = vadd.f32 1.0, %v51_v16 }
  0x12   :  { %v177_v21 = vrot.slane %v1202_v11, 7  ;;  %v185_v22 = vrot.slane %v1204_v12, 7  ;;  %v252_v23 = vrot.slane %v1204_v12, 1  ;;  %v260_v24 = vrot.slane %v1206_v13, 1  ;;  %v112_v31 = vld [vmem:[%s2214_s1] sm:$0xff]  ;;  %v55_v40 = vld [vmem:[#allocation2 + $0x38] sm:$0xff] }
  0x13   :  { %v1224_v27 = vstv %s1186_s0  ;;  %v145_v29 = vmul.f32 %v113_v19, %v81_v17  ;;  %v146_v30 = vmul.f32 %v114_v20, %v82_v18  ;;  %v80_v35 = vadd.f32 1.0, %v48_v26  ;;  %v119_v47 = vld [vmem:[%s2214_s1 + $0x38] sm:$0xff]  ;;  %v56_v17 = vld [vmem:[#allocation2 + $0x40] sm:$0xff] }
  0x14   :  { %v228_v32 = vsel %vm210_vm0, %v177_v21, %v185_v22  ;;  %v285_v33 = vsel %vm275_vm1, %v252_v23, %v260_v24  ;;  %v1238_v34 = vstv %s1188_s2  ;;  %v147_v38 = vmul.f32 %v115_v25, %v83_v28  ;;  %v59_v25 = vld [vmem:[#allocation2 + $0x58] sm:$0xff] }
  0x15   :  { %v316_v36 = vadd.f32 %v285_v33, %v228_v32  ;;  %v501_v37 = vmul.f32 %v1238_v34, %v1204_v12  ;;  %v184_v39 = vrot.slane %v145_v29, 7  ;;  %v192_v41 = vrot.slane %v146_v30, 7 }
  0x16   :  { %v259_v42 = vrot.slane %v146_v30, 1  ;;  %v144_v43 = vmul.f32 %v112_v31, %v80_v35  ;;  %v267_v45 = vrot.slane %v147_v38, 1  ;;  %v251_v46 = vrot.slane %v145_v29, 1  ;;  %v120_v31 = vld [vmem:[%s2214_s1 + $0x40] sm:$0xff] }
  0x17   :  { %v534_v44 = vmul.f32 %v1224_v27, %v316_v36  ;;  %v219_v48 = vsel %vm210_vm0, %v184_v39, %v192_v41  ;;  %v87_v50 = vadd.f32 1.0, %v55_v40  ;;  %v244_v54 = vrot.slane %v1202_v11, 1 }
  0x18   :  { %v176_v49 = vrot.slane %v144_v43, 7  ;;  %v276_v52 = vsel %vm275_vm1, %v259_v42, %v267_v45  ;;  %v284_v53 = vsel %vm275_vm1, %v251_v46, %v259_v42  ;;  %v498_v56 = vmul.f32 %v1238_v34, %v146_v30 }
  0x19   :  { %v1248_v51 = vadd.f32 %v534_v44, %v501_v37  ;;  %v313_v55 = vadd.f32 %v276_v52, %v219_v48  ;;  %v1258_v58 = vmul.f32 %v119_v47, %v87_v50  ;;  %v497_v60 = vmul.f32 %v1238_v34, %v145_v29  ;;  %v121_v37 = vld [vmem:[%s2214_s1 + $0x48] sm:$0xff] }
  0x1a   :  { %v227_v57 = vsel %vm210_vm0, %v176_v49, %v184_v39  ;;  %v293_v61 = vsel %vm275_vm1, %v244_v54, %v252_v23  ;;  %vm343_vm2 = vcmp.eq.s32.totalorder %v1200_v10, 0  ;;  %v200_v0 = vrot.slane %v147_v38, 7  ;;  %v57_v23 = vld [vmem:[#allocation2 + $0x48] sm:$0xff] }
  0x1b   :  { %605 = vrot.lane.b32.xlu2 %v1248_v51, %s1154_s12  ;;  %v312_v59 = vadd.f32 %v284_v53, %v227_v57  ;;  %v531_v62 = vmul.f32 %v1224_v27, %v313_v55  ;;  %v201_v63 = vrot.slane %v1258_v58, 7  ;;  %v351_v2 = vmul.f32 2.0, %v293_v61 }
  0x1c   :  { %v243_v4 = vrot.slane %v144_v43, 1  ;;  %v1272_v5 = vadd.s32 24, %v1200_v10  ;;  %v211_v8 = vsel %vm210_vm0, %v192_v41, %v200_v0  ;;  %v235_v9 = vsel %vm210_vm0, %v200_v0, %v176_v49  ;;  %v58_v0 = vld [vmem:[#allocation2 + $0x50] sm:$0xff] }
  0x1d   :  { %v530_v1 = vmul.f32 %v1224_v27, %v312_v59  ;;  %v1274_v6 = vadd.f32 %v531_v62, %v498_v56  ;;  %v236_v7 = vsel %vm210_vm0, %v201_v63, %v177_v21  ;;  %v500_v18 = vmul.f32 %v1238_v34, %v1202_v11 }
  0x1e   :  { %v315_v15 = vadd.f32 %v293_v61, %v236_v7  ;;  %v300_v16 = vsel %vm275_vm1, %v267_v45, %v243_v4  ;;  %vm422_vm3 = vcmp.eq.s32.totalorder %v1272_v5, 31  ;;  %v426_v20 = vmul.f32 2.0, %v211_v8 }
  0x1f   :  { %v1282_v14 = vadd.f32 %v530_v1, %v497_v60  ;;  %599 = vrot.lane.b32.xlu1 %v1274_v6, %s1154_s12  ;;  %v314_v19 = vadd.f32 %v300_v16, %v211_v8  ;;  %v292_v21 = vsel %vm275_vm1, %v243_v4, %v251_v46  ;;  %v499_v28 = vmul.f32 %v1238_v34, %v147_v38  ;;  %v123_v38 = vld [vmem:[%s2214_s1 + $0x58] sm:$0xff]  ;;  %v122_v8 = vld [vmem:[%s2214_s1 + $0x50] sm:$0xff] }
  0x20   :  { %v391_v26 = vsel %vm343_vm2, %v351_v2, %v315_v15  ;;  %v311_v29 = vadd.f32 %v292_v21, %v235_v9  ;;  %v347_v30 = vmul.f32 2.0, %v292_v21  ;;  %v496_v35 = vmul.f32 %v1238_v34, %v144_v43 }
  0x21   :  { %597 = vrot.lane.b32.xlu0 %v1282_v14, %s1154_s12  ;;  %v533_v32 = vmul.f32 %v1224_v27, %v391_v26  ;;  %v466_v33 = vsel %vm422_vm3, %v426_v20, %v314_v19  ;;  %v88_v36 = vadd.f32 1.0, %v56_v17  ;;  %v89_v41 = vadd.f32 1.0, %v57_v23  ;;  %v61_v17 = vld [vmem:[#allocation2 + $0x68] sm:$0xff] }
  0x22   :  { %v532_v39 = vmul.f32 %v1224_v27, %v466_v33  ;;  %v387_v40 = vsel %vm343_vm2, %v347_v30, %v311_v29  ;;  %v91_v42 = vadd.f32 1.0, %v59_v25  ;;  %v193_v46 = vrot.slane %v1206_v13, 7  ;;  %v62_v25 = vld [vmem:[#allocation2 + $0x70] sm:$0xff] }
  0x23   :  { %v1314_v44 = vadd.f32 %v533_v32, %v500_v18  ;;  %v529_v43 = vmul.f32 %v1224_v27, %v387_v40  ;;  %v152_v45 = vmul.f32 %v120_v31, %v88_v36  ;;  %v1320_v48 = vmul.f32 %v121_v37, %v89_v41 }
  0x24   :  { %v1318_v47 = vadd.f32 %v532_v39, %v499_v28  ;;  %v1322_v49 = vmul.f32 %v123_v38, %v91_v42  ;;  %v268_v50 = vrot.slane %v1258_v58, 1  ;;  %v212_v60 = vsel %vm210_vm0, %v193_v46, %v201_v63  ;;  %v63_v28 = vld [vmem:[#allocation2 + $0x78] sm:$0xff]  ;;  %v125_v38 = vld [vmem:[%s2214_s1 + $0x68] sm:$0xff]  ;;  %v126_v39 = vld [vmem:[%s2214_s1 + $0x70] sm:$0xff] }
  0x25   :  { %603 = vrot.lane.b32.xlu2 %v1314_v44, %s1154_s12  ;;  %v1327_v52 = vadd.f32 %v529_v43, %v496_v35  ;;  %v178_v53 = vrot.slane %v152_v45, 7  ;;  %v245_v55 = vrot.slane %v152_v45, 1  ;;  %v253_v57 = vrot.slane %v1320_v48, 1 }
  0x26   :  { %v202_v56 = vrot.slane %v1322_v49, 7  ;;  %v504_v59 = vmul.f32 %v1238_v34, %v152_v45  ;;  %v301_v61 = vsel %vm275_vm1, %v268_v50, %v244_v54  ;;  %v503_v62 = vmul.f32 %v1238_v34, %v1258_v58  ;;  %v127_v45 = vld [vmem:[%s2214_s1 + $0x78] sm:$0xff] }
  0x27   :  { %601 = vrot.lane.b32.xlu1 %v1318_v47, %s1154_s12  ;;  %v294_v2 = vsel %vm275_vm1, %v245_v55, %v253_v57  ;;  %v318_v4 = vadd.f32 %v301_v61, %v212_v60  ;;  %v430_v63 = vmul.f32 2.0, %v212_v60  ;;  %v220_v54 = vsel %vm210_vm0, %v185_v22, %v193_v46  ;;  %v60_v46 = vld [vmem:[#allocation2 + $0x60] sm:$0xff] }
  0x28   :  { %v237_v1 = vsel %vm210_vm0, %v202_v56, %v178_v53  ;;  %v355_v11 = vmul.f32 2.0, %v294_v2  ;;  %v277_v58 = vsel %vm275_vm1, %v260_v24, %v268_v50  ;;  %v502_v16 = vmul.f32 %v1238_v34, %v1206_v13 }
  0x29   :  { %595 = vrot.lane.b32.xlu0 %v1327_v52, %s1154_s12  ;;  %v319_v7 = vadd.f32 %v294_v2, %v237_v1  ;;  %v470_v9 = vsel %vm422_vm3, %v430_v63, %v318_v4  ;;  %v317_v15 = vadd.f32 %v277_v58, %v220_v54  ;;  %v90_v12 = vadd.f32 1.0, %v58_v0  ;;  %v124_v2 = vld [vmem:[%s2214_s1 + $0x60] sm:$0xff] }
  0x2a   :  { %v536_v18 = vmul.f32 %v1224_v27, %v470_v9  ;;  %v269_v24 = vrot.slane %v1322_v49, 1  ;;  %v186_v23 = vrot.slane %v1320_v48, 7  ;;  %v93_v29 = vadd.f32 1.0, %v61_v17 }
  0x2b   :  { %v395_v22 = vsel %vm343_vm2, %v355_v11, %v319_v7  ;;  %v535_v20 = vmul.f32 %v1224_v27, %v317_v15  ;;  %v154_v21 = vmul.f32 %v122_v8, %v90_v12  ;;  %v507_v35 = vmul.f32 %v1238_v34, %v1322_v49 }
  0x2c   :  { %v537_v19 = vmul.f32 %v1224_v27, %v395_v22  ;;  %v1370_v26 = vadd.f32 %v536_v18, %v503_v62  ;;  %v302_v13 = vsel %vm275_vm1, %v269_v24, %v245_v55  ;;  %v505_v36 = vmul.f32 %v1238_v34, %v1320_v48  ;;  %v64_v18 = vld [vmem:[#allocation2 + $0x80] sm:$0xff] }
  0x2d   :  { %v1376_v31 = vadd.f32 %v535_v20, %v502_v16  ;;  %v194_v32 = vrot.slane %v154_v21, 7  ;;  %v261_v33 = vrot.slane %v154_v21, 1  ;;  %v94_v37 = vadd.f32 1.0, %v62_v25 }
  0x2e   :  { %v1374_v30 = vadd.f32 %v537_v19, %v504_v59  ;;  %v506_v41 = vmul.f32 %v1238_v34, %v154_v21  ;;  %v229_v42 = vsel %vm210_vm0, %v178_v53, %v186_v23  ;;  %v95_v43 = vadd.f32 1.0, %v63_v28  ;;  %v65_v21 = vld [vmem:[#allocation2 + $0x88] sm:$0xff] }
  0x2f   :  { %609 = vrot.lane.b32.xlu1 %v1370_v26, %s1154_s12  ;;  %v213_v40 = vsel %vm210_vm0, %v194_v32, %v202_v56  ;;  %v221_v50 = vsel %vm210_vm0, %v186_v23, %v194_v32  ;;  %v278_v55 = vsel %vm275_vm1, %v261_v33, %v269_v24  ;;  %v286_v59 = vsel %vm275_vm1, %v253_v57, %v261_v33 }
  0x30   :  { %611 = vrot.lane.b32.xlu2 %v1374_v30, %s1154_s12  ;;  %v322_v48 = vadd.f32 %v302_v13, %v213_v40  ;;  %v434_v49 = vmul.f32 2.0, %v213_v40  ;;  %v321_v56 = vadd.f32 %v278_v55, %v221_v50  ;;  %v157_v60 = vmul.f32 %v125_v38, %v93_v29  ;;  %v66_v29 = vld [vmem:[#allocation2 + $0x90] sm:$0xff]  ;;  %v129_v38 = vld [vmem:[%s2214_s1 + $0x88] sm:$0xff] }
  0x31   :  { %607 = vrot.lane.b32.xlu0 %v1376_v31, %s1154_s12  ;;  %v1408_v53 = vmul.f32 %v126_v39, %v94_v37  ;;  %v320_v62 = vadd.f32 %v286_v59, %v229_v42  ;;  %v1412_v0 = vmul.f32 %v127_v45, %v95_v43  ;;  %v92_v1 = vadd.f32 1.0, %v60_v46  ;;  %v128_v37 = vld [vmem:[%s2214_s1 + $0x80] sm:$0xff]  ;;  %v67_v39 = vld [vmem:[#allocation2 + $0x98] sm:$0xff]  ;;  %v130_v45 = vld [vmem:[%s2214_s1 + $0x90] sm:$0xff] }
  0x32   :  { %v474_v61 = vsel %vm422_vm3, %v434_v49, %v322_v48  ;;  %v539_v63 = vmul.f32 %v1224_v27, %v321_v56  ;;  %v187_v7 = vrot.slane %v157_v60, 7  ;;  %v254_v22 = vrot.slane %v157_v60, 1 }
  0x33   :  { %v540_v4 = vmul.f32 %v1224_v27, %v474_v61  ;;  %v195_v57 = vrot.slane %v1408_v53, 7  ;;  %v538_v11 = vmul.f32 %v1224_v27, %v320_v62  ;;  %v262_v54 = vrot.slane %v1408_v53, 1 }
  0x34   :  { %v270_v58 = vrot.slane %v1412_v0, 1  ;;  %v1425_v9 = vadd.f32 %v539_v63, %v506_v41  ;;  %v156_v16 = vmul.f32 %v124_v2, %v92_v1  ;;  %v510_v19 = vmul.f32 %v1238_v34, %v1408_v53  ;;  %v131_v53 = vld [vmem:[%s2214_s1 + $0x98] sm:$0xff] }
  0x35   :  { %v1423_v8 = vadd.f32 %v540_v4, %v507_v35  ;;  %v222_v15 = vsel %vm210_vm0, %v187_v7, %v195_v57  ;;  %v1429_v12 = vadd.f32 %v538_v11, %v505_v36  ;;  %v287_v23 = vsel %vm275_vm1, %v254_v22, %v262_v54 }
  0x36   :  { %v279_v17 = vsel %vm275_vm1, %v262_v54, %v270_v58  ;;  %v179_v20 = vrot.slane %v156_v16, 7  ;;  %v509_v25 = vmul.f32 %v1238_v34, %v157_v60  ;;  %v203_v13 = vrot.slane %v1412_v0, 7 }
  0x37   :  { %615 = vrot.lane.b32.xlu1 %v1425_v9, %s1154_s12  ;;  %v325_v24 = vadd.f32 %v279_v17, %v222_v15  ;;  %v246_v28 = vrot.slane %v156_v16, 1  ;;  %v508_v35 = vmul.f32 %v1238_v34, %v156_v16  ;;  %v96_v36 = vadd.f32 1.0, %v64_v18 }
  0x38   :  { %617 = vrot.lane.b32.xlu2 %v1423_v8, %s1154_s12  ;;  %v230_v33 = vsel %vm210_vm0, %v179_v20, %v187_v7  ;;  %v238_v41 = vsel %vm210_vm0, %v203_v13, %v179_v20  ;;  %v97_v43 = vadd.f32 1.0, %v65_v21  ;;  %v98_v50 = vadd.f32 1.0, %v66_v29  ;;  %v68_v20 = vld [vmem:[#allocation2 + $0xa0] sm:$0xff]  ;;  %v69_v21 = vld [vmem:[#allocation2 + $0xa8] sm:$0xff] }
  0x39   :  { %613 = vrot.lane.b32.xlu0 %v1429_v12, %s1154_s12  ;;  %v543_v32 = vmul.f32 %v1224_v27, %v325_v24  ;;  %v324_v40 = vadd.f32 %v287_v23, %v230_v33  ;;  %v295_v42 = vsel %vm275_vm1, %v246_v28, %v254_v22  ;;  %v1465_v56 = vmul.f32 %v128_v37, %v96_v36 }
  0x3a   :  { %v323_v48 = vadd.f32 %v295_v42, %v238_v41  ;;  %v359_v49 = vmul.f32 2.0, %v295_v42  ;;  %v1467_v59 = vmul.f32 %v129_v38, %v97_v43  ;;  %v99_v60 = vadd.f32 1.0, %v67_v39  ;;  %v133_v41 = vld [vmem:[%s2214_s1 + $0xa8] sm:$0xff]  ;;  %v135_v42 = vld [vmem:[%s2214_s1 + $0xb8] sm:$0xff] }
  0x3b   :  { %v1462_v46 = vadd.f32 %v543_v32, %v510_v19  ;;  %v542_v55 = vmul.f32 %v1224_v27, %v324_v40  ;;  %v1474_v62 = vmul.f32 %v130_v45, %v98_v50  ;;  %v180_v4 = vrot.slane %v1465_v56, 7  ;;  %v71_v32 = vld [vmem:[#allocation2 + $0xb8] sm:$0xff] }
  0x3c   :  { %v399_v61 = vsel %vm343_vm2, %v359_v49, %v323_v48  ;;  %v188_v63 = vrot.slane %v1467_v59, 7  ;;  %v255_v7 = vrot.slane %v1467_v59, 1  ;;  %v1485_v54 = vmul.f32 %v131_v53, %v99_v60 }
  0x3d   :  { %v1476_v1 = vadd.f32 %v542_v55, %v509_v25  ;;  %v541_v2 = vmul.f32 %v1224_v27, %v399_v61  ;;  %v263_v11 = vrot.slane %v1474_v62, 1  ;;  %v214_v15 = vsel %vm210_vm0, %v195_v57, %v203_v13 }
  0x3e   :  { %v231_v17 = vsel %vm210_vm0, %v180_v4, %v188_v63  ;;  %v247_v22 = vrot.slane %v1465_v56, 1  ;;  %v513_v57 = vmul.f32 %v1238_v34, %v1467_v59  ;;  %v204_v24 = vrot.slane %v1485_v54, 7 }
  0x3f   :  { %621 = vrot.lane.b32.xlu1 %v1476_v1, %s1154_s12  ;;  %v1491_v16 = vadd.f32 %v541_v2, %v508_v35  ;;  %v288_v18 = vsel %vm275_vm1, %v255_v7, %v263_v11  ;;  %v303_v19 = vsel %vm275_vm1, %v270_v58, %v246_v28  ;;  %v512_v13 = vmul.f32 %v1238_v34, %v1465_v56  ;;  %v132_v28 = vld [vmem:[%s2214_s1 + $0xa0] sm:$0xff] }
  0x40   :  { %623 = vrot.lane.b32.xlu2 %v1462_v46, %s1154_s12  ;;  %v328_v23 = vadd.f32 %v288_v18, %v231_v17  ;;  %v296_v25 = vsel %vm275_vm1, %v247_v22, %v255_v7  ;;  %v326_v29 = vadd.f32 %v303_v19, %v214_v15  ;;  %v239_v33 = vsel %vm210_vm0, %v204_v24, %v180_v4 }
  0x41   :  { %619 = vrot.lane.b32.xlu0 %v1491_v16, %s1154_s12  ;;  %v363_v35 = vmul.f32 2.0, %v296_v25  ;;  %v438_v36 = vmul.f32 2.0, %v214_v15  ;;  %v511_v58 = vmul.f32 %v1238_v34, %v1412_v0  ;;  %v327_v38 = vadd.f32 %v296_v25, %v239_v33 }
  0x42   :  { %v546_v37 = vmul.f32 %v1224_v27, %v328_v23  ;;  %v100_v39 = vadd.f32 1.0, %v68_v20  ;;  %v101_v40 = vadd.f32 1.0, %v69_v21  ;;  %v103_v43 = vadd.f32 1.0, %v71_v32  ;;  %v70_v21 = vld [vmem:[#allocation2 + $0xb0] sm:$0xff] }
  0x43   :  { %v478_v0 = vsel %vm422_vm3, %v438_v36, %v326_v29  ;;  %v196_v45 = vrot.slane %v1474_v62, 7  ;;  %v271_v48 = vrot.slane %v1485_v54, 1  ;;  %v403_v50 = vsel %vm343_vm2, %v363_v35, %v327_v38  ;;  %v134_v36 = vld [vmem:[%s2214_s1 + $0xb0] sm:$0xff] }
  0x44   :  { %v1531_v49 = vadd.f32 %v546_v37, %v513_v57  ;;  %v544_v55 = vmul.f32 %v1224_v27, %v478_v0  ;;  %v164_v56 = vmul.f32 %v132_v28, %v100_v39  ;;  %v545_v60 = vmul.f32 %v1224_v27, %v403_v50  ;;  %v73_v37 = vld [vmem:[#allocation2 + $0xc8] sm:$0xff]  ;;  %v74_v0 = vld [vmem:[#allocation2 + $0xd0] sm:$0xff] }
  0x45   :  { %v1537_v53 = vmul.f32 %v133_v41, %v101_v40  ;;  %v1539_v61 = vmul.f32 %v135_v42, %v103_v43  ;;  %v215_v2 = vsel %vm210_vm0, %v196_v45, %v204_v24  ;;  %v304_v24 = vsel %vm275_vm1, %v271_v48, %v247_v22 }
  0x46   :  { %v1545_v4 = vadd.f32 %v544_v55, %v511_v58  ;;  %v181_v7 = vrot.slane %v164_v56, 7  ;;  %v248_v15 = vrot.slane %v164_v56, 1  ;;  %v1547_v17 = vadd.f32 %v545_v60, %v512_v13 }
  0x47   :  { %v205_v18 = vrot.slane %v1539_v61, 7  ;;  %v256_v57 = vrot.slane %v1537_v53, 1  ;;  %v516_v19 = vmul.f32 %v1238_v34, %v164_v56  ;;  %v442_v20 = vmul.f32 2.0, %v215_v2 }
  0x48   :  { %629 = vrot.lane.b32.xlu2 %v1531_v49, %s1154_s12  ;;  %627 = vrot.lane.b32.xlu1 %v1547_v17, %s1154_s12  ;;  %v330_v13 = vadd.f32 %v304_v24, %v215_v2  ;;  %v515_v29 = vmul.f32 %v1238_v34, %v1485_v54  ;;  %v223_v22 = vsel %vm210_vm0, %v188_v63, %v196_v45  ;;  %v102_v59 = vadd.f32 1.0, %v70_v21  ;;  %v75_v45 = vld [vmem:[#allocation2 + $0xd8] sm:$0xff]  ;;  %v137_v21 = vld [vmem:[%s2214_s1 + $0xc8] sm:$0xff] }
  0x49   :  { %625 = vrot.lane.b32.xlu0 %v1545_v4, %s1154_s12  ;;  %v240_v23 = vsel %vm210_vm0, %v205_v18, %v181_v7  ;;  %v297_v25 = vsel %vm275_vm1, %v248_v15, %v256_v57  ;;  %v280_v35 = vsel %vm275_vm1, %v263_v11, %v271_v48  ;;  %v514_v28 = vmul.f32 %v1238_v34, %v1474_v62 }
  0x4a   :  { %v331_v32 = vadd.f32 %v297_v25, %v240_v23  ;;  %v367_v33 = vmul.f32 2.0, %v297_v25  ;;  %v482_v58 = vsel %vm422_vm3, %v442_v20, %v330_v13  ;;  %v329_v54 = vadd.f32 %v280_v35, %v223_v22  ;;  %v139_v25 = vld [vmem:[%s2214_s1 + $0xd8] sm:$0xff]  ;;  %v72_v13 = vld [vmem:[#allocation2 + $0xc0] sm:$0xff] }
  0x4b   :  { %v548_v38 = vmul.f32 %v1224_v27, %v482_v58  ;;  %v272_v11 = vrot.slane %v1539_v61, 1  ;;  %v166_v41 = vmul.f32 %v134_v36, %v102_v59  ;;  %v189_v42 = vrot.slane %v1537_v53, 7 }
  0x4c   :  { %v407_v63 = vsel %vm343_vm2, %v367_v33, %v331_v32  ;;  %v547_v40 = vmul.f32 %v1224_v27, %v329_v54  ;;  %v105_v48 = vadd.f32 1.0, %v73_v37  ;;  %v519_v2 = vmul.f32 %v1238_v34, %v1539_v61  ;;  %v136_v37 = vld [vmem:[%s2214_s1 + $0xc0] sm:$0xff] }
  0x4d   :  { %v549_v39 = vmul.f32 %v1224_v27, %v407_v63  ;;  %v1586_v43 = vadd.f32 %v548_v38, %v515_v29  ;;  %v305_v62 = vsel %vm275_vm1, %v272_v11, %v248_v15  ;;  %v197_v56 = vrot.slane %v166_v41, 7  ;;  %v138_v15 = vld [vmem:[%s2214_s1 + $0xd0] sm:$0xff] }
  0x4e   :  { %v1592_v55 = vadd.f32 %v547_v40, %v514_v28  ;;  %v264_v60 = vrot.slane %v166_v41, 1  ;;  %v517_v24 = vmul.f32 %v1238_v34, %v1537_v53  ;;  %v106_v20 = vadd.f32 1.0, %v74_v0 }
  0x4f   :  { %v1590_v50 = vadd.f32 %v549_v39, %v516_v19  ;;  %v216_v61 = vsel %vm210_vm0, %v197_v56, %v205_v18  ;;  %v518_v53 = vmul.f32 %v1238_v34, %v166_v41  ;;  %v232_v19 = vsel %vm210_vm0, %v181_v7, %v189_v42 }
  0x50   :  { %633 = vrot.lane.b32.xlu1 %v1586_v43, %s1154_s12  ;;  %v107_v23 = vadd.f32 1.0, %v75_v45  ;;  %v334_v29 = vadd.f32 %v305_v62, %v216_v61  ;;  %v446_v32 = vmul.f32 2.0, %v216_v61  ;;  %v224_v33 = vsel %vm210_vm0, %v189_v42, %v197_v56  ;;  %v77_v61 = vld [vmem:[#allocation2 + $0xe8] sm:$0xff] }
  0x51   :  { %635 = vrot.lane.b32.xlu2 %v1590_v50, %s1154_s12  ;;  %631 = vrot.lane.b32.xlu0 %v1592_v55, %s1154_s12  ;;  %v281_v18 = vsel %vm275_vm1, %v264_v60, %v272_v11  ;;  %v289_v7 = vsel %vm275_vm1, %v256_v57, %v264_v60  ;;  %v169_v35 = vmul.f32 %v137_v21, %v105_v48  ;;  %v104_v59 = vadd.f32 1.0, %v72_v13 }
  0x52   :  { %v333_v22 = vadd.f32 %v281_v18, %v224_v33  ;;  %v1624_v36 = vmul.f32 %v138_v15, %v106_v20  ;;  %v486_v58 = vsel %vm422_vm3, %v446_v32, %v334_v29  ;;  %v332_v54 = vadd.f32 %v289_v7, %v232_v19  ;;  %v76_v20 = vld [vmem:[#allocation2 + $0xe0] sm:$0xff]  ;;  %v79_v7 = vld [vmem:[#allocation2 + $0xf8] sm:$0xff] }
  0x53   :  { %v1628_v28 = vmul.f32 %v139_v25, %v107_v23  ;;  %v552_v63 = vmul.f32 %v1224_v27, %v486_v58  ;;  %v190_v11 = vrot.slane %v169_v35, 7  ;;  %v168_v45 = vmul.f32 %v136_v37, %v104_v59  ;;  %v78_v25 = vld [vmem:[#allocation2 + $0xf0] sm:$0xff]  ;;  %v140_v18 = vld [vmem:[%s2214_s1 + $0xe0] sm:$0xff] }
  0x54   :  { %v551_v38 = vmul.f32 %v1224_v27, %v333_v22  ;;  %v198_v57 = vrot.slane %v1624_v36, 7  ;;  %v550_v39 = vmul.f32 %v1224_v27, %v332_v54  ;;  %v265_v40 = vrot.slane %v1624_v36, 1  ;;  %v141_v22 = vld [vmem:[%s2214_s1 + $0xe8] sm:$0xff]  ;;  %v142_v59 = vld [vmem:[%s2214_s1 + $0xf0] sm:$0xff] }
  0x55   :  { %v273_v41 = vrot.slane %v1628_v28, 1  ;;  %v1639_v42 = vadd.f32 %v552_v63, %v519_v2  ;;  %v257_v60 = vrot.slane %v169_v35, 1  ;;  %v522_v21 = vmul.f32 %v1238_v34, %v1624_v36 }
  0x56   :  { %v1641_v0 = vadd.f32 %v551_v38, %v518_v53  ;;  %v225_v62 = vsel %vm210_vm0, %v190_v11, %v198_v57  ;;  %v1645_v48 = vadd.f32 %v550_v39, %v517_v24  ;;  %v182_v15 = vrot.slane %v168_v45, 7 }
  0x57   :  { %2229 = vst [vmem:[#allocation11_spill] sm:$0xff] %v1639_v42  ;;  %v282_v56 = vsel %vm275_vm1, %v265_v40, %v273_v41  ;;  %v290_v24 = vsel %vm275_vm1, %v257_v60, %v265_v40  ;;  %v521_v53 = vmul.f32 %v1238_v34, %v169_v35  ;;  %v206_v19 = vrot.slane %v1628_v28, 7 }
  0x58   :  { %2230 = vst [vmem:[#allocation12_spill] sm:$0xff] %v1641_v0  ;;  %639 = vrot.lane.b32.xlu1 %v1641_v0, %s1154_s12  ;;  %v337_v2 = vadd.f32 %v282_v56, %v225_v62  ;;  %v249_v23 = vrot.slane %v168_v45, 1  ;;  %v233_v29 = vsel %vm210_vm0, %v182_v15, %v190_v11  ;;  %v520_v32 = vmul.f32 %v1238_v34, %v168_v45  ;;  %v143_v56 = vld [vmem:[%s2214_s1 + $0xf8] sm:$0xff]  ;;  %s1155_s1 = smov 127  }
  0x59   :  { %641 = vrot.lane.b32.xlu2 %v1639_v42, %s1154_s12  ;;  %637 = vrot.lane.b32.xlu0 %v1645_v48, %s1154_s12  ;;  %v108_v33 = vadd.f32 1.0, %v76_v20  ;;  %v336_v35 = vadd.f32 %v290_v24, %v233_v29  ;;  %v241_v36 = vsel %vm210_vm0, %v206_v19, %v182_v15  ;;  %v109_v54 = vadd.f32 1.0, %v77_v61 }
  0x5a   :  { %v555_v13 = vmul.f32 %v1224_v27, %v337_v2  ;;  %v298_v58 = vsel %vm275_vm1, %v249_v23, %v257_v60  ;;  %v110_v11 = vadd.f32 1.0, %v78_v25  ;;  %v111_v45 = vadd.f32 1.0, %v79_v7 }
  0x5b   :  { %v335_v63 = vadd.f32 %v298_v58, %v241_v36  ;;  %v371_v38 = vmul.f32 2.0, %v298_v58  ;;  %v554_v39 = vmul.f32 %v1224_v27, %v336_v35  ;;  %v172_v40 = vmul.f32 %v140_v18, %v108_v33 }
  0x5c   :  { %v1678_v37 = vadd.f32 %v555_v13, %v522_v21  ;;  %v173_v62 = vmul.f32 %v141_v22, %v109_v54  ;;  %v174_v20 = vmul.f32 %v142_v59, %v110_v11  ;;  %v175_v13 = vmul.f32 %v143_v56, %v111_v45 }
  0x5d   :  { %v411_v60 = vsel %vm343_vm2, %v371_v38, %v335_v63  ;;  %v1686_v2 = vadd.f32 %v554_v39, %v521_v53  ;;  %v183_v15 = vrot.slane %v172_v40, 7  ;;  %v217_v29 = vsel %vm210_vm0, %v198_v57, %v206_v19 }
  0x5e   :  { %2231 = vst [vmem:[#allocation13_spill] sm:$0xff] %v1678_v37  ;;  %v553_v21 = vmul.f32 %v1224_v27, %v411_v60  ;;  %v191_v61 = vrot.slane %v173_v62, 7  ;;  %v258_v24 = vrot.slane %v173_v62, 1  ;;  %v266_v25 = vrot.slane %v174_v20, 1 }
  0x5f   :  { %2232 = vst [vmem:[#allocation14_spill] sm:$0xff] %v1686_v2  ;;  %v250_v18 = vrot.slane %v172_v40, 1  ;;  %v207_v7 = vrot.slane %v175_v13, 7  ;;  %v306_v35 = vsel %vm275_vm1, %v273_v41, %v249_v23  ;;  %v525_v19 = vmul.f32 %v1238_v34, %v173_v62 }
  0x60   :  { %645 = vrot.lane.b32.xlu1 %v1686_v2, %s1154_s12  ;;  %v1695_v33 = vadd.f32 %v553_v21, %v520_v32  ;;  %v234_v53 = vsel %vm210_vm0, %v183_v15, %v191_v61  ;;  %v291_v22 = vsel %vm275_vm1, %v258_v24, %v266_v25  ;;  %v338_v36 = vadd.f32 %v306_v35, %v217_v29 }
  0x61   :  { %647 = vrot.lane.b32.xlu2 %v1678_v37, %s1154_s12  ;;  %v340_v57 = vadd.f32 %v291_v22, %v234_v53  ;;  %v299_v32 = vsel %vm275_vm1, %v250_v18, %v258_v24  ;;  %v242_v58 = vsel %vm210_vm0, %v207_v7, %v183_v15  ;;  %v450_v59 = vmul.f32 2.0, %v217_v29 }
  0x62   :  { %643 = vrot.lane.b32.xlu0 %v1695_v33, %s1154_s12  ;;  %v375_v54 = vmul.f32 2.0, %v299_v32  ;;  %v523_v63 = vmul.f32 %v1238_v34, %v1628_v28  ;;  %v339_v23 = vadd.f32 %v299_v32, %v242_v58  ;;  %v199_v38 = vrot.slane %v174_v20, 7 }
  0x63   :  { %v558_v41 = vmul.f32 %v1224_v27, %v340_v57  ;;  %v274_v11 = vrot.slane %v175_v13, 1  ;;  %v524_v39 = vmul.f32 %v1238_v34, %v172_v40  ;;  %v490_v62 = vsel %vm422_vm3, %v450_v59, %v338_v36 }
  0x64   :  { %v415_v56 = vsel %vm343_vm2, %v375_v54, %v339_v23  ;;  %v556_v60 = vmul.f32 %v1224_v27, %v490_v62  ;;  %v218_v28 = vsel %vm210_vm0, %v199_v38, %v207_v7  ;;  %v226_v40 = vsel %vm210_vm0, %v191_v61, %v199_v38 }
  0x65   :  { %v1716_v45 = vadd.f32 %v558_v41, %v525_v19  ;;  %v557_v21 = vmul.f32 %v1224_v27, %v415_v56  ;;  %v307_v15 = vsel %vm275_vm1, %v274_v11, %v250_v18  ;;  %v454_v24 = vmul.f32 2.0, %v218_v28 }
  0x66   :  { %v1730_v29 = vadd.f32 %v556_v60, %v523_v63  ;;  %v342_v53 = vadd.f32 %v307_v15, %v218_v28  ;;  %v283_v22 = vsel %vm275_vm1, %v266_v25, %v274_v11  ;;  %v526_v61 = vmul.f32 %v1238_v34, %v174_v20 }
  0x67   :  { %2233 = vst [vmem:[#allocation15_spill] sm:$0xff] %v1716_v45  ;;  %v1734_v35 = vadd.f32 %v557_v21, %v524_v39  ;;  %v341_v7 = vadd.f32 %v283_v22, %v226_v40  ;;  %v527_v57 = vmul.f32 %v1238_v34, %v175_v13  ;;  %v1862_v22 = vand.u32 127, %v208_v3 }
  0x68   :  { %v494_v18 = vsel %vm422_vm3, %v454_v24, %v342_v53 }
  0x69   :  { %653 = vrot.lane.b32.xlu2 %v1716_v45, %s1154_s12  ;;  %2234 = vst [vmem:[#allocation16_spill] sm:$0xff] %v1734_v35  ;;  %651 = vrot.lane.b32.xlu1 %v1734_v35, %s1154_s12  ;;  %v560_v19 = vmul.f32 %v1224_v27, %v494_v18  ;;  %v559_v10 = vmul.f32 %v1224_v27, %v341_v7  ;;  %vm757_vm4 = vcmp.eq.s32.totalorder %v1862_v22, 0  ;;  %vm824_vm5 = vcmp.eq.s32.totalorder %v1862_v22, 127 }
  0x6a   :  { %649 = vrot.lane.b32.xlu0 %v1730_v29, %s1154_s12 }
  0x6b   :  { %v1746_v25 = vadd.f32 %v559_v10, %v526_v61  ;;  %v1748_v32 = vadd.f32 %v560_v19, %v527_v57 }
  0x6d   :  { %2235 = vst [vmem:[#allocation17_spill] sm:$0xff] %v1748_v32 }
  0x71   :  { %659 = vrot.lane.b32.xlu2 %v1327_v52, %s1155_s1  ;;  %657 = vrot.lane.b32.xlu1 %v1748_v32, %s1154_s12 }
  0x72   :  { %655 = vrot.lane.b32.xlu0 %v1746_v25, %s1154_s12  ;;  %s1075_s12 = sld [smem:[#allocation6 + $0x2]] }
  0x75   :  { %v1752_v5 = vpop.permute.xlu2 %605 }
  0x78   :  { %s594_s13 = smul.f32 %s1075_s12, %s1188_s2 }
  0x79   :  { %665 = vrot.lane.b32.xlu2 %v1318_v47, %s1155_s1  ;;  %663 = vrot.lane.b32.xlu1 %v1274_v6, %s1155_s1  ;;  %s593_s14 = smul.f32 %s1075_s12, %s1186_s0  ;;  %s1156_s0 = smov [#allocation7]  }
  0x7a   :  { %661 = vrot.lane.b32.xlu0 %v1282_v14, %s1155_s1  ;;  %v1867_v18 = vstv %s594_s13  ;;  %s1058_s2 = sshll.u32 %s1156_s0, 4  ;;  %s1059_s2 = int_to_ptr.vmem [resolvable:$true] %s1058_s2 }
  0x7f   :  { %v1764_v27 = vpop.permute.xlu2 %603 }
  0x81   :  { %671 = vrot.lane.b32.xlu2 %v1376_v31, %s1155_s1  ;;  %669 = vrot.lane.b32.xlu1 %v1248_v51, %s1155_s1 }
  0x82   :  { %667 = vrot.lane.b32.xlu0 %v1314_v44, %s1155_s1 }
  0x89   :  { %677 = vrot.lane.b32.xlu2 %v1429_v12, %s1155_s1  ;;  %675 = vrot.lane.b32.xlu1 %v1374_v30, %s1155_s1 }
  0x8a   :  { %v1772_v34 = vpop.permute.xlu2 %611  ;;  %673 = vrot.lane.b32.xlu0 %v1370_v26, %s1155_s1 }
  0x91   :  { %v1780_v20 = vpop.permute.xlu1 %599  ;;  %683 = vrot.lane.b32.xlu2 %v1491_v16, %s1155_s1  ;;  %681 = vrot.lane.b32.xlu1 %v1423_v8, %s1155_s1 }
  0x92   :  { %v1782_v13 = vpop.permute.xlu2 %617  ;;  %679 = vrot.lane.b32.xlu0 %v1425_v9, %s1155_s1 }
  0x93   :  { %v1784_v36 = vpop.permute.xlu0 %597 }
  0x99   :  { %v602_v58 = vpop.permute.xlu1 %601  ;;  %689 = vrot.lane.b32.xlu2 %v1545_v4, %s1155_s1  ;;  %687 = vrot.lane.b32.xlu1 %v1462_v46, %s1155_s1 }
  0x9a   :  { %v1792_v54 = vpop.permute.xlu2 %623  ;;  %685 = vrot.lane.b32.xlu0 %v1476_v1, %s1155_s1 }
  0x9b   :  { %v596_v59 = vpop.permute.xlu0 %595 }
  0x9c   :  { %v825_v3 = vmul.f32 2.0, %v596_v59 }
  0xa1   :  { %v1800_v63 = vpop.permute.xlu1 %609  ;;  %695 = vrot.lane.b32.xlu2 %v1592_v55, %s1155_s1  ;;  %693 = vrot.lane.b32.xlu1 %v1531_v49, %s1155_s1 }
  0xa2   :  { %v1804_v23 = vpop.permute.xlu2 %629  ;;  %691 = vrot.lane.b32.xlu0 %v1547_v17, %s1155_s1 }
  0xa3   :  { %v1802_v41 = vpop.permute.xlu0 %607 }
  0xa9   :  { %v1812_v38 = vpop.permute.xlu1 %615  ;;  %701 = vrot.lane.b32.xlu2 %v1645_v48, %s1155_s1  ;;  %699 = vrot.lane.b32.xlu1 %v1590_v50, %s1155_s1 }
  0xaa   :  { %697 = vrot.lane.b32.xlu0 %v1586_v43, %s1155_s1 }
  0xab   :  { %v1814_v11 = vpop.permute.xlu0 %613  ;;  %v1818_v39 = vpop.permute.xlu2 %635 }
  0xb1   :  { %v1824_v62 = vpop.permute.xlu1 %621  ;;  %707 = vrot.lane.b32.xlu2 %v1695_v33, %s1155_s1  ;;  %705 = vrot.lane.b32.xlu1 %v1639_v42, %s1155_s1 }
  0xb2   :  { %703 = vrot.lane.b32.xlu0 %v1641_v0, %s1155_s1 }
  0xb3   :  { %v1828_v56 = vpop.permute.xlu0 %619  ;;  %v1830_v60 = vpop.permute.xlu2 %641 }
  0xb4   :  { %2236 = vst [vmem:[#allocation18_spill] sm:$0xff] %v1830_v60 }
  0xb9   :  { %713 = vrot.lane.b32.xlu2 %v1730_v29, %s1155_s1  ;;  %711 = vrot.lane.b32.xlu1 %v1678_v37, %s1155_s1 }
  0xba   :  { %v1842_v15 = vpop.permute.xlu1 %627  ;;  %709 = vrot.lane.b32.xlu0 %v1686_v2, %s1155_s1  ;;  %v1884_v2 = vstv %s1076_s15 }
  0xbb   :  { %v1838_v28 = vpop.permute.xlu0 %625  ;;  %v1840_v21 = vpop.permute.xlu2 %647 }
  0xbc   :  { %2237 = vst [vmem:[#allocation19_spill] sm:$0xff] %v1840_v21 }
  0xc1   :  { %719 = vrot.lane.b32.xlu2 %v1746_v25, %s1155_s1  ;;  %717 = vrot.lane.b32.xlu1 %v1716_v45, %s1155_s1  ;;  %v1875_v45 = vstv %s593_s14 }
  0xc2   :  { %v1850_v24 = vpop.permute.xlu1 %633  ;;  %715 = vrot.lane.b32.xlu0 %v1734_v35, %s1155_s1  ;;  %v892_v35 = vmul.f32 %v1867_v18, %v1327_v52 }
  0xc3   :  { %v1854_v40 = vpop.permute.xlu2 %653  ;;  %v1856_v53 = vpop.permute.xlu0 %631 }
  0xc4   :  { %2238 = vst [vmem:[#allocation20_spill] sm:$0xff] %v1854_v40 }
  0xca   :  { %v1865_v7 = vpop.permute.xlu1 %639  ;;  %721 = vrot.lane.b32.xlu0 %v1748_v32, %s1155_s1 }
  0xcb   :  { %2239 = vst [vmem:[#allocation21_spill] sm:$0xff] %v1865_v7  ;;  %v660_v61 = vpop.permute.xlu2 %659  ;;  %v1872_v57 = vpop.permute.xlu0 %637  ;;  %v828_v7 = vmul.f32 2.0, %v602_v58 }
  0xcc   :  { %v725_v19 = vadd.f32 %v660_v61, %v596_v59  ;;  %v758_v10 = vmul.f32 2.0, %v660_v61 }
  0xce   :  { %v792_v40 = vsel %vm757_vm4, %v758_v10, %v725_v19  ;;  %v895_v19 = vmul.f32 %v1867_v18, %v1318_v47  ;;  %v898_v47 = vmul.f32 %v1867_v18, %v1376_v31  ;;  %v834_v31 = vmul.f32 2.0, %v1814_v11 }
  0xcf   :  { %v859_v32 = vsel %vm824_vm5, %v825_v3, %v792_v40  ;;  %v831_v3 = vmul.f32 2.0, %v1802_v41 }
  0xd0   :  { %v925_v37 = vmul.f32 %v1875_v45, %v859_v32 }
  0xd2   :  { %v957_v21 = vadd.f32 %v925_v37, %v892_v35  ;;  %v1887_v59 = vpop.permute.xlu1 %645 }
  0xd3   :  { %v666_v42 = vpop.permute.xlu2 %665  ;;  %2240 = vst [vmem:[#allocation22_spill] sm:$0xff] %v1887_v59 }
  0xd4   :  { %v990_v61 = vsub.f32 %v957_v21, %v1884_v2  ;;  %v728_v0 = vadd.f32 %v666_v42, %v602_v58  ;;  %v761_v60 = vmul.f32 2.0, %v666_v42  ;;  %v1889_v52 = vpop.permute.xlu0 %643 }
  0xd6   :  { %1022 = vst [vmem:[#allocation7] sm:$0xff] %v990_v61  ;;  %v795_v32 = vsel %vm757_vm4, %v761_v60, %v728_v0 }
  0xd7   :  { %v862_v37 = vsel %vm824_vm5, %v828_v7, %v795_v32 }
  0xd8   :  { %v928_v35 = vmul.f32 %v1875_v45, %v862_v37 }
  0xda   :  { %v960_v21 = vadd.f32 %v928_v35, %v895_v19 }
  0xdb   :  { %v672_v40 = vpop.permute.xlu2 %671  ;;  %v1905_v0 = vpop.permute.xlu1 %651 }
  0xdc   :  { %v993_v10 = vsub.f32 %v960_v21, %v1884_v2  ;;  %v731_v42 = vadd.f32 %v672_v40, %v1802_v41  ;;  %v764_v58 = vmul.f32 2.0, %v672_v40  ;;  %v1901_v59 = vpop.permute.xlu0 %649  ;;  %v901_v40 = vmul.f32 %v1867_v18, %v1429_v12 }
  0xdd   :  { %v837_v12 = vmul.f32 2.0, %v1828_v56 }
  0xde   :  { %1025 = vst [vmem:[#allocation7 + $0x18] sm:$0xff] %v993_v10  ;;  %v798_v60 = vsel %vm757_vm4, %v764_v58, %v731_v42 }
  0xdf   :  { %v865_v7 = vsel %vm824_vm5, %v831_v3, %v798_v60 }
  0xe0   :  { %v931_v61 = vmul.f32 %v1875_v45, %v865_v7 }
  0xe2   :  { %v963_v19 = vadd.f32 %v931_v61, %v898_v47 }
  0xe3   :  { %v678_v32 = vpop.permute.xlu2 %677  ;;  %v1919_v10 = vpop.permute.xlu1 %657 }
  0xe4   :  { %v996_v41 = vsub.f32 %v963_v19, %v1884_v2  ;;  %v734_v37 = vadd.f32 %v678_v32, %v1814_v11  ;;  %v767_v35 = vmul.f32 2.0, %v678_v32  ;;  %v1915_v21 = vpop.permute.xlu0 %655  ;;  %v904_v32 = vmul.f32 %v1867_v18, %v1491_v16 }
  0xe5   :  { %v827_v16 = vmul.f32 2.0, %v1780_v20 }
  0xe6   :  { %1028 = vst [vmem:[#allocation7 + $0x30] sm:$0xff] %v996_v41  ;;  %v801_v42 = vsel %vm757_vm4, %v767_v35, %v734_v37 }
  0xe7   :  { %v868_v58 = vsel %vm824_vm5, %v834_v31, %v801_v42 }
  0xe8   :  { %v934_v3 = vmul.f32 %v1875_v45, %v868_v58 }
  0xea   :  { %v966_v47 = vadd.f32 %v934_v3, %v901_v40  ;;  %v826_v40 = vmul.f32 2.0, %v1784_v36  ;;  %v893_v3 = vmul.f32 %v1867_v18, %v1282_v14 }
  0xeb   :  { %v684_v60 = vpop.permute.xlu2 %683  ;;  %v664_v41 = vpop.permute.xlu1 %663 }
  0xec   :  { %v999_v11 = vsub.f32 %v966_v47, %v1884_v2  ;;  %v737_v7 = vadd.f32 %v684_v60, %v1828_v56  ;;  %v770_v61 = vmul.f32 2.0, %v684_v60  ;;  %v662_v19 = vpop.permute.xlu0 %661  ;;  %v727_v42 = vadd.f32 %v664_v41, %v1780_v20 }
  0xed   :  { %v726_v35 = vadd.f32 %v662_v19, %v1784_v36  ;;  %v759_v31 = vmul.f32 2.0, %v662_v19  ;;  %v760_v58 = vmul.f32 2.0, %v664_v41 }
  0xee   :  { %1031 = vst [vmem:[#allocation7 + $0x48] sm:$0xff] %v999_v11  ;;  %v804_v37 = vsel %vm757_vm4, %v770_v61, %v737_v7  ;;  %v894_v11 = vmul.f32 %v1867_v18, %v1274_v6 }
  0xef   :  { %v871_v56 = vsel %vm824_vm5, %v837_v12, %v804_v37  ;;  %v793_v60 = vsel %vm757_vm4, %v759_v31, %v726_v35  ;;  %v794_v36 = vsel %vm757_vm4, %v760_v58, %v727_v42  ;;  %v907_v31 = vmul.f32 %v1867_v18, %v1545_v4 }
  0xf0   :  { %v937_v47 = vmul.f32 %v1875_v45, %v871_v56  ;;  %v860_v7 = vsel %vm824_vm5, %v826_v40, %v793_v60  ;;  %v861_v61 = vsel %vm824_vm5, %v827_v16, %v794_v36  ;;  %v829_v40 = vmul.f32 2.0, %v1764_v27 }
  0xf1   :  { %v926_v20 = vmul.f32 %v1875_v45, %v860_v7  ;;  %v927_v12 = vmul.f32 %v1875_v45, %v861_v61  ;;  %v840_v42 = vmul.f32 2.0, %v1838_v28  ;;  %v830_v61 = vmul.f32 2.0, %v1752_v5 }
  0xf2   :  { %v969_v14 = vadd.f32 %v937_v47, %v904_v32 }
  0xf3   :  { %v690_v19 = vpop.permute.xlu2 %689  ;;  %v958_v37 = vadd.f32 %v926_v20, %v893_v3  ;;  %v959_v58 = vadd.f32 %v927_v12, %v894_v11  ;;  %v670_v16 = vpop.permute.xlu1 %669  ;;  %v896_v11 = vmul.f32 %v1867_v18, %v1314_v44  ;;  %v897_v20 = vmul.f32 %v1867_v18, %v1248_v51 }
  0xf4   :  { %v1002_v41 = vsub.f32 %v969_v14, %v1884_v2  ;;  %v740_v6 = vadd.f32 %v690_v19, %v1838_v28  ;;  %v773_v35 = vmul.f32 2.0, %v690_v19  ;;  %v668_v32 = vpop.permute.xlu0 %667  ;;  %v730_v4 = vadd.f32 %v670_v16, %v1752_v5 }
  0xf5   :  { %v991_v56 = vsub.f32 %v958_v37, %v1884_v2  ;;  %v729_v3 = vadd.f32 %v668_v32, %v1764_v27  ;;  %v762_v60 = vmul.f32 2.0, %v668_v32  ;;  %v992_v36 = vsub.f32 %v959_v58, %v1884_v2 }
  0xf6   :  { %1034 = vst [vmem:[#allocation7 + $0x60] sm:$0xff] %v1002_v41  ;;  %v807_v47 = vsel %vm757_vm4, %v773_v35, %v740_v6  ;;  %v763_v7 = vmul.f32 2.0, %v670_v16  ;;  %v910_v32 = vmul.f32 %v1867_v18, %v1592_v55 }
  0xf7   :  { %v874_v28 = vsel %vm824_vm5, %v840_v42, %v807_v47  ;;  %1023 = vst [vmem:[#allocation7 + $0x8] sm:$0xff] %v991_v56  ;;  %v796_v27 = vsel %vm757_vm4, %v762_v60, %v729_v3  ;;  %v843_v56 = vmul.f32 2.0, %v1856_v53 }
  0xf8   :  { %v940_v14 = vmul.f32 %v1875_v45, %v874_v28  ;;  %1024 = vst [vmem:[#allocation7 + $0x10] sm:$0xff] %v992_v36  ;;  %v797_v12 = vsel %vm757_vm4, %v763_v7, %v730_v4  ;;  %v863_v19 = vsel %vm824_vm5, %v829_v40, %v796_v27  ;;  %v832_v40 = vmul.f32 2.0, %v1800_v63 }
  0xf9   :  { %v864_v44 = vsel %vm824_vm5, %v830_v61, %v797_v12  ;;  %v929_v41 = vmul.f32 %v1875_v45, %v863_v19  ;;  %v833_v61 = vmul.f32 2.0, %v1772_v34  ;;  %v900_v27 = vmul.f32 %v1867_v18, %v1374_v30 }
  0xfa   :  { %v972_v5 = vadd.f32 %v940_v14, %v907_v31  ;;  %v930_v37 = vmul.f32 %v1875_v45, %v864_v44 }
  0xfb   :  { %v696_v6 = vpop.permute.xlu2 %695  ;;  %v961_v42 = vadd.f32 %v929_v41, %v896_v11  ;;  %v676_v3 = vpop.permute.xlu1 %675  ;;  %v899_v11 = vmul.f32 %v1867_v18, %v1370_v26 }
  0xfc   :  { %v1005_v35 = vsub.f32 %v972_v5, %v1884_v2  ;;  %v743_v51 = vadd.f32 %v696_v6, %v1856_v53  ;;  %v776_v58 = vmul.f32 2.0, %v696_v6  ;;  %v962_v16 = vadd.f32 %v930_v37, %v897_v20  ;;  %v674_v31 = vpop.permute.xlu0 %673 }
  0xfd   :  { %v994_v47 = vsub.f32 %v961_v42, %v1884_v2  ;;  %v732_v36 = vadd.f32 %v674_v31, %v1800_v63  ;;  %v765_v4 = vmul.f32 2.0, %v674_v31  ;;  %v733_v55 = vadd.f32 %v676_v3, %v1772_v34 }
  0xfe   :  { %1037 = vst [vmem:[#allocation7 + $0x78] sm:$0xff] %v1005_v35  ;;  %v810_v60 = vsel %vm757_vm4, %v776_v58, %v743_v51  ;;  %v995_v7 = vsub.f32 %v962_v16, %v1884_v2  ;;  %v766_v28 = vmul.f32 2.0, %v676_v3  ;;  %v913_v35 = vmul.f32 %v1867_v18, %v1645_v48 }
  0xff   :  { %v877_v53 = vsel %vm824_vm5, %v843_v56, %v810_v60  ;;  %1026 = vst [vmem:[#allocation7 + $0x20] sm:$0xff] %v994_v47  ;;  %v799_v63 = vsel %vm757_vm4, %v765_v4, %v732_v36  ;;  %v835_v42 = vmul.f32 2.0, %v1812_v38  ;;  %v846_v51 = vmul.f32 2.0, %v1872_v57 }
 0x100   :  { %v943_v14 = vmul.f32 %v1875_v45, %v877_v53  ;;  %1027 = vst [vmem:[#allocation7 + $0x28] sm:$0xff] %v995_v7  ;;  %v800_v20 = vsel %vm757_vm4, %v766_v28, %v733_v55  ;;  %v866_v12 = vsel %vm824_vm5, %v832_v40, %v799_v63  ;;  %v902_v36 = vmul.f32 %v1867_v18, %v1425_v9 }
 0x101   :  { %v867_v26 = vsel %vm824_vm5, %v833_v61, %v800_v20  ;;  %v932_v19 = vmul.f32 %v1875_v45, %v866_v12  ;;  %v836_v4 = vmul.f32 2.0, %v1782_v13  ;;  %v903_v55 = vmul.f32 %v1867_v18, %v1423_v8 }
 0x102   :  { %v975_v34 = vadd.f32 %v943_v14, %v910_v32  ;;  %v933_v44 = vmul.f32 %v1875_v45, %v867_v26  ;;  %v916_v12 = vmul.f32 %v1867_v18, %v1695_v33  ;;  %v838_v26 = vmul.f32 2.0, %v1824_v62 }
 0x103   :  { %v702_v5 = vpop.permute.xlu2 %701  ;;  %v964_v37 = vadd.f32 %v932_v19, %v899_v11  ;;  %v682_v56 = vpop.permute.xlu1 %681 }
 0x104   :  { %v1008_v41 = vsub.f32 %v975_v34, %v1884_v2  ;;  %v746_v30 = vadd.f32 %v702_v5, %v1872_v57  ;;  %v779_v6 = vmul.f32 2.0, %v702_v5  ;;  %v965_v58 = vadd.f32 %v933_v44, %v900_v27  ;;  %v680_v32 = vpop.permute.xlu0 %679 }
 0x105   :  { %v997_v40 = vsub.f32 %v964_v37, %v1884_v2  ;;  %v735_v31 = vadd.f32 %v680_v32, %v1812_v38  ;;  %v768_v47 = vmul.f32 2.0, %v680_v32  ;;  %v736_v48 = vadd.f32 %v682_v56, %v1782_v13 }
 0x106   :  { %1040 = vst [vmem:[#allocation7 + $0x90] sm:$0xff] %v1008_v41  ;;  %v813_v16 = vsel %vm757_vm4, %v779_v6, %v746_v30  ;;  %v998_v3 = vsub.f32 %v965_v58, %v1884_v2  ;;  %v769_v60 = vmul.f32 2.0, %v682_v56  ;;  %v849_v34 = vmul.f32 2.0, %v1889_v52 }
 0x107   :  { %v880_v57 = vsel %vm824_vm5, %v846_v51, %v813_v16  ;;  %1029 = vst [vmem:[#allocation7 + $0x38] sm:$0xff] %v997_v40  ;;  %v802_v38 = vsel %vm757_vm4, %v768_v47, %v735_v31  ;;  %v905_v51 = vmul.f32 %v1867_v18, %v1476_v1  ;;  %v839_v58 = vmul.f32 2.0, %v1792_v54 }
 0x108   :  { %v946_v7 = vmul.f32 %v1875_v45, %v880_v57  ;;  %1030 = vst [vmem:[#allocation7 + $0x40] sm:$0xff] %v998_v3  ;;  %v803_v28 = vsel %vm757_vm4, %v769_v60, %v736_v48  ;;  %v869_v53 = vsel %vm824_vm5, %v835_v42, %v802_v38  ;;  %v906_v40 = vmul.f32 %v1867_v18, %v1462_v46 }
 0x109   :  { %v870_v9 = vsel %vm824_vm5, %v836_v4, %v803_v28  ;;  %v935_v11 = vmul.f32 %v1875_v45, %v869_v53  ;;  %v841_v4 = vmul.f32 2.0, %v1842_v15 }
 0x10a   :  { %v978_v13 = vadd.f32 %v946_v7, %v913_v35  ;;  %v936_v61 = vmul.f32 %v1875_v45, %v870_v9  ;;  %v852_v7 = vmul.f32 2.0, %v1901_v59 }
 0x10b   :  { %v708_v14 = vpop.permute.xlu2 %707  ;;  %v967_v27 = vadd.f32 %v935_v11, %v902_v36  ;;  %v688_v41 = vpop.permute.xlu1 %687  ;;  %v919_v36 = vmul.f32 %v1867_v18, %v1730_v29 }
 0x10c   :  { %v1011_v63 = vsub.f32 %v978_v13, %v1884_v2  ;;  %v749_v8 = vadd.f32 %v708_v14, %v1889_v52  ;;  %v782_v20 = vmul.f32 2.0, %v708_v14  ;;  %v968_v19 = vadd.f32 %v936_v61, %v903_v55  ;;  %v686_v44 = vpop.permute.xlu0 %685 }
 0x10d   :  { %v1000_v5 = vsub.f32 %v967_v27, %v1884_v2  ;;  %v738_v30 = vadd.f32 %v686_v44, %v1824_v62  ;;  %v771_v6 = vmul.f32 2.0, %v686_v44  ;;  %v739_v33 = vadd.f32 %v688_v41, %v1792_v54 }
 0x10e   :  { %1043 = vst [vmem:[#allocation7 + $0xa8] sm:$0xff] %v1011_v63  ;;  %v816_v37 = vsel %vm757_vm4, %v782_v20, %v749_v8  ;;  %v1001_v35 = vsub.f32 %v968_v19, %v1884_v2  ;;  %v772_v42 = vmul.f32 2.0, %v688_v41  ;;  %v908_v63 = vmul.f32 %v1867_v18, %v1547_v17 }
 0x10f   :  { %v883_v52 = vsel %vm824_vm5, %v849_v34, %v816_v37  ;;  %1032 = vst [vmem:[#allocation7 + $0x50] sm:$0xff] %v1000_v5  ;;  %v805_v62 = vsel %vm757_vm4, %v771_v6, %v738_v30  ;;  %v842_v27 = vmul.f32 2.0, %v1804_v23  ;;  %v909_v20 = vmul.f32 %v1867_v18, %v1531_v49 }
 0x110   :  { %v949_v32 = vmul.f32 %v1875_v45, %v883_v52  ;;  %1033 = vst [vmem:[#allocation7 + $0x58] sm:$0xff] %v1001_v35  ;;  %v806_v56 = vsel %vm757_vm4, %v772_v42, %v739_v33  ;;  %v872_v16 = vsel %vm824_vm5, %v838_v26, %v805_v62  ;;  %v922_v30 = vmul.f32 %v1867_v18, %v1746_v25 }
 0x111   :  { %v873_v1 = vsel %vm824_vm5, %v839_v58, %v806_v56  ;;  %v938_v31 = vmul.f32 %v1875_v45, %v872_v16  ;;  %v844_v6 = vmul.f32 2.0, %v1850_v24  ;;  %v855_v35 = vmul.f32 2.0, %v1915_v21 }
 0x112   :  { %v981_v54 = vadd.f32 %v949_v32, %v916_v12  ;;  %v939_v47 = vmul.f32 %v1875_v45, %v873_v1  ;;  %v911_v16 = vmul.f32 %v1867_v18, %v1586_v43  ;;  %v845_v1 = vmul.f32 2.0, %v1818_v39 }
 0x113   :  { %v714_v3 = vpop.permute.xlu2 %713  ;;  %v970_v60 = vadd.f32 %v938_v31, %v905_v51  ;;  %v694_v53 = vpop.permute.xlu1 %693  ;;  %v912_v31 = vmul.f32 %v1867_v18, %v1590_v50 }
 0x114   :  { %v1014_v48 = vsub.f32 %v981_v54, %v1884_v2  ;;  %v752_v46 = vadd.f32 %v714_v3, %v1901_v59  ;;  %v785_v57 = vmul.f32 2.0, %v714_v3  ;;  %v971_v38 = vadd.f32 %v939_v47, %v906_v40  ;;  %v692_v55 = vpop.permute.xlu0 %691 }
 0x115   :  { %v1003_v28 = vsub.f32 %v970_v60, %v1884_v2  ;;  %v741_v13 = vadd.f32 %v692_v55, %v1842_v15  ;;  %v774_v11 = vmul.f32 2.0, %v692_v55  ;;  %v742_v29 = vadd.f32 %v694_v53, %v1804_v23 }
 0x116   :  { %1046 = vst [vmem:[#allocation7 + $0xc0] sm:$0xff] %v1014_v48  ;;  %v819_v9 = vsel %vm757_vm4, %v785_v57, %v752_v46  ;;  %v1004_v61 = vsub.f32 %v971_v38, %v1884_v2  ;;  %v775_v14 = vmul.f32 2.0, %v694_v53  ;;  %v2241_v38 = vld [vmem:[#allocation21_spill] sm:$0xff] }
 0x117   :  { %v886_v59 = vsel %vm824_vm5, %v852_v7, %v819_v9  ;;  %1035 = vst [vmem:[#allocation7 + $0x68] sm:$0xff] %v1003_v28  ;;  %v808_v15 = vsel %vm757_vm4, %v774_v11, %v741_v13  ;;  %v847_v53 = vmul.f32 2.0, %v2241_v38  ;;  %v2242_v13 = vld [vmem:[#allocation18_spill] sm:$0xff] }
 0x118   :  { %v952_v8 = vmul.f32 %v1875_v45, %v886_v59  ;;  %1036 = vst [vmem:[#allocation7 + $0x70] sm:$0xff] %v1004_v61  ;;  %v809_v12 = vsel %vm757_vm4, %v775_v14, %v742_v29  ;;  %v875_v26 = vsel %vm824_vm5, %v841_v4, %v808_v15  ;;  %v2243_v29 = vld [vmem:[#allocation12_spill] sm:$0xff]  ;;  %v848_v59 = vmul.f32 2.0, %v2242_v13 }
 0x119   :  { %v876_v17 = vsel %vm824_vm5, %v842_v27, %v809_v12  ;;  %v941_v34 = vmul.f32 %v1875_v45, %v875_v26  ;;  %v914_v14 = vmul.f32 %v1867_v18, %v2243_v29  ;;  %v2244_v27 = vld [vmem:[#allocation11_spill] sm:$0xff] }
 0x11a   :  { %v984_v23 = vadd.f32 %v952_v8, %v919_v36  ;;  %v942_v19 = vmul.f32 %v1875_v45, %v876_v17  ;;  %v915_v8 = vmul.f32 %v1867_v18, %v2244_v27 }
 0x11b   :  { %v720_v44 = vpop.permute.xlu2 %719  ;;  %v973_v41 = vadd.f32 %v941_v34, %v908_v63  ;;  %v700_v51 = vpop.permute.xlu1 %699 }
 0x11c   :  { %v1017_v5 = vsub.f32 %v984_v23, %v1884_v2  ;;  %v755_v49 = vadd.f32 %v720_v44, %v1915_v21  ;;  %v788_v37 = vmul.f32 2.0, %v720_v44  ;;  %v974_v33 = vadd.f32 %v942_v19, %v909_v20  ;;  %v698_v42 = vpop.permute.xlu0 %697 }
 0x11d   :  { %v1006_v52 = vsub.f32 %v973_v41, %v1884_v2  ;;  %v744_v32 = vadd.f32 %v698_v42, %v1850_v24  ;;  %v777_v62 = vmul.f32 2.0, %v698_v42  ;;  %v745_v25 = vadd.f32 %v700_v51, %v1818_v39  ;;  %v2245_v41 = vld [vmem:[#allocation22_spill] sm:$0xff] }
 0x11e   :  { %1049 = vst [vmem:[#allocation7 + $0xd8] sm:$0xff] %v1017_v5  ;;  %v822_v58 = vsel %vm757_vm4, %v788_v37, %v755_v49  ;;  %v1007_v40 = vsub.f32 %v974_v33, %v1884_v2  ;;  %v778_v56 = vmul.f32 2.0, %v700_v51 }
 0x11f   :  { %v889_v21 = vsel %vm824_vm5, %v855_v35, %v822_v58  ;;  %1038 = vst [vmem:[#allocation7 + $0x80] sm:$0xff] %v1006_v52  ;;  %v811_v24 = vsel %vm757_vm4, %v777_v62, %v744_v32  ;;  %v2246_v35 = vld [vmem:[#allocation19_spill] sm:$0xff]  ;;  %v2247_v52 = vld [vmem:[#allocation14_spill] sm:$0xff]  ;;  %v2248_v62 = vld [vmem:[#allocation13_spill] sm:$0xff] }
 0x120   :  { %v955_v54 = vmul.f32 %v1875_v45, %v889_v21  ;;  %1039 = vst [vmem:[#allocation7 + $0x88] sm:$0xff] %v1007_v40  ;;  %v812_v47 = vsel %vm757_vm4, %v778_v56, %v745_v25  ;;  %v878_v3 = vsel %vm824_vm5, %v844_v6, %v811_v24  ;;  %v917_v51 = vmul.f32 %v1867_v18, %v2247_v52 }
 0x121   :  { %v879_v43 = vsel %vm824_vm5, %v845_v1, %v812_v47  ;;  %v944_v48 = vmul.f32 %v1875_v45, %v878_v3  ;;  %v851_v58 = vmul.f32 2.0, %v2246_v35  ;;  %v918_v40 = vmul.f32 %v1867_v18, %v2248_v62 }
 0x122   :  { %v987_v39 = vadd.f32 %v955_v54, %v922_v30  ;;  %v945_v60 = vmul.f32 %v1875_v45, %v879_v43  ;;  %v850_v30 = vmul.f32 2.0, %v2245_v41 }
 0x123   :  { %v976_v57 = vadd.f32 %v944_v48, %v911_v16  ;;  %v706_v7 = vpop.permute.xlu1 %705  ;;  %v853_v48 = vmul.f32 2.0, %v1905_v0 }
 0x124   :  { %v1020_v46 = vsub.f32 %v987_v39, %v1884_v2  ;;  %v977_v36 = vadd.f32 %v945_v60, %v912_v31  ;;  %v704_v50 = vpop.permute.xlu0 %703  ;;  %v748_v11 = vadd.f32 %v706_v7, %v2242_v13  ;;  %v781_v61 = vmul.f32 2.0, %v706_v7 }
 0x125   :  { %v1009_v4 = vsub.f32 %v976_v57, %v1884_v2  ;;  %v747_v55 = vadd.f32 %v704_v50, %v2241_v38  ;;  %v780_v28 = vmul.f32 2.0, %v704_v50  ;;  %v2250_v50 = vld [vmem:[#allocation16_spill] sm:$0xff] }
 0x126   :  { %1052 = vst [vmem:[#allocation7 + $0xf0] sm:$0xff] %v1020_v46  ;;  %v1010_v9 = vsub.f32 %v977_v36, %v1884_v2  ;;  %v815_v15 = vsel %vm757_vm4, %v781_v61, %v748_v11  ;;  %v2249_v46 = vld [vmem:[#allocation20_spill] sm:$0xff] }
 0x127   :  { %1041 = vst [vmem:[#allocation7 + $0x98] sm:$0xff] %v1009_v4  ;;  %v814_v63 = vsel %vm757_vm4, %v780_v28, %v747_v55  ;;  %v882_v12 = vsel %vm824_vm5, %v848_v59, %v815_v15  ;;  %v920_v4 = vmul.f32 %v1867_v18, %v2250_v50  ;;  %v854_v7 = vmul.f32 2.0, %v2249_v46  ;;  %v2251_v55 = vld [vmem:[#allocation15_spill] sm:$0xff] }
 0x128   :  { %1042 = vst [vmem:[#allocation7 + $0xa0] sm:$0xff] %v1010_v9  ;;  %v881_v20 = vsel %vm824_vm5, %v847_v53, %v814_v63  ;;  %v948_v17 = vmul.f32 %v1875_v45, %v882_v12  ;;  %v921_v28 = vmul.f32 %v1867_v18, %v2251_v55 }
 0x129   :  { %v947_v26 = vmul.f32 %v1875_v45, %v881_v20  ;;  %v2252_v20 = vld [vmem:[#allocation17_spill] sm:$0xff] }
 0x12a   :  { %v980_v34 = vadd.f32 %v948_v17, %v915_v8  ;;  %v856_v8 = vmul.f32 2.0, %v1919_v10  ;;  %v923_v12 = vmul.f32 %v1867_v18, %v2252_v20 }
 0x12b   :  { %v979_v23 = vadd.f32 %v947_v26, %v914_v14  ;;  %v712_v5 = vpop.permute.xlu1 %711 }
 0x12c   :  { %v710_v19 = vpop.permute.xlu0 %709  ;;  %v1013_v6 = vsub.f32 %v980_v34, %v1884_v2  ;;  %v751_v33 = vadd.f32 %v712_v5, %v2246_v35  ;;  %v784_v42 = vmul.f32 2.0, %v712_v5 }
 0x12d   :  { %v1012_v44 = vsub.f32 %v979_v23, %v1884_v2  ;;  %v750_v49 = vadd.f32 %v710_v19, %v2245_v41  ;;  %v783_v37 = vmul.f32 2.0, %v710_v19 }
 0x12e   :  { %1045 = vst [vmem:[#allocation7 + $0xb8] sm:$0xff] %v1013_v6  ;;  %v818_v25 = vsel %vm757_vm4, %v784_v42, %v751_v33 }
 0x12f   :  { %1044 = vst [vmem:[#allocation7 + $0xb0] sm:$0xff] %v1012_v44  ;;  %v817_v32 = vsel %vm757_vm4, %v783_v37, %v750_v49  ;;  %v885_v21 = vsel %vm824_vm5, %v851_v58, %v818_v25 }
 0x130   :  { %v884_v56 = vsel %vm824_vm5, %v850_v30, %v817_v32  ;;  %v951_v1 = vmul.f32 %v1875_v45, %v885_v21 }
 0x131   :  { %v950_v16 = vmul.f32 %v1875_v45, %v884_v56 }
 0x132   :  { %v983_v24 = vadd.f32 %v951_v1, %v918_v40 }
 0x133   :  { %v982_v54 = vadd.f32 %v950_v16, %v917_v51  ;;  %v718_v3 = vpop.permute.xlu1 %717 }
 0x134   :  { %v716_v31 = vpop.permute.xlu0 %715  ;;  %v1016_v60 = vsub.f32 %v983_v24, %v1884_v2  ;;  %v754_v57 = vadd.f32 %v718_v3, %v2249_v46  ;;  %v787_v36 = vmul.f32 2.0, %v718_v3 }
 0x135   :  { %v1015_v47 = vsub.f32 %v982_v54, %v1884_v2  ;;  %v753_v43 = vadd.f32 %v716_v31, %v1905_v0  ;;  %v786_v39 = vmul.f32 2.0, %v716_v31 }
 0x136   :  { %1048 = vst [vmem:[#allocation7 + $0xd0] sm:$0xff] %v1016_v60  ;;  %v821_v0 = vsel %vm757_vm4, %v787_v36, %v754_v57 }
 0x137   :  { %1047 = vst [vmem:[#allocation7 + $0xc8] sm:$0xff] %v1015_v47  ;;  %v820_v38 = vsel %vm757_vm4, %v786_v39, %v753_v43  ;;  %v888_v9 = vsel %vm824_vm5, %v854_v7, %v821_v0 }
 0x138   :  { %v887_v53 = vsel %vm824_vm5, %v853_v48, %v820_v38  ;;  %v954_v11 = vmul.f32 %v1875_v45, %v888_v9 }
 0x139   :  { %v953_v13 = vmul.f32 %v1875_v45, %v887_v53 }
 0x13a   :  { %v986_v29 = vadd.f32 %v954_v11, %v921_v28 }
 0x13b   :  { %v985_v61 = vadd.f32 %v953_v13, %v920_v4 }
 0x13c   :  { %v722_v14 = vpop.permute.xlu0 %721  ;;  %v1019_v15 = vsub.f32 %v986_v29, %v1884_v2 }
 0x13d   :  { %v1018_v59 = vsub.f32 %v985_v61, %v1884_v2  ;;  %v756_v63 = vadd.f32 %v722_v14, %v1919_v10  ;;  %v789_v27 = vmul.f32 2.0, %v722_v14 }
 0x13e   :  { %1051 = vst [vmem:[#allocation7 + $0xe8] sm:$0xff] %v1019_v15 }
 0x13f   :  { %1050 = vst [vmem:[#allocation7 + $0xe0] sm:$0xff] %v1018_v59  ;;  %v823_v26 = vsel %vm757_vm4, %v789_v27, %v756_v63 }
 0x140   :  { %v890_v17 = vsel %vm824_vm5, %v856_v8, %v823_v26 }
 0x141   :  { %v956_v23 = vmul.f32 %v1875_v45, %v890_v17 }
 0x143   :  { %v988_v10 = vadd.f32 %v956_v23, %v923_v12 }
 0x145   :  { %v1021_v34 = vsub.f32 %v988_v10, %v1884_v2 }
 0x147   :  { %1053 = vst [vmem:[#allocation7 + $0xf8] sm:$0xff] %v1021_v34 }
 0x148   :  { %1066 = dma.vmem_to_hbm [thread:$0]  %s1059_s2, 4096, %s1061_s18, [#allocation4], %s1151_s20, %s1151_s20, %s1152_s21  }
 0x149   :  { %1148 = dma.done.wait [#allocation4], 4096  }
 0x14a   :  { %1149 = vsyncadd [#allocation4], 4294963200 }
 0x14b   :  { %1071 = vsyncpa [#allocation3], 1 }
 0x14c   :  { %1072 = vsyncpa [#allocation4], 1 }
 0x14d   :  { %1073 = vsyncpa [#allocation5], 1 }

</bundles_post_ra>
